<compile_context>
chip_gen: v6e
topology: v6e:2x2x1
jax: 0.10.0
libtpu: 0.0.40
codegen_flags: <defaults>
</compile_context>

<pallas_src>
import functools

import numpy as np
import jax
import jax.numpy as jnp
from jax.experimental import pallas as pl
from jax.experimental.pallas import tpu as pltpu


# --------------------------------------------------------------------------- kernels
def _l1_kernel(emb_ref, w_ref, b_ref, g_ref, o_ref, stats_ref):
    # (B, nz) @ (nz, H0*W0*C1) + bias ; fused per-channel sum / sum-sq epilogue (BN1).
    y = jnp.dot(emb_ref[...], w_ref[...], preferred_element_type=jnp.float32)
    y = y + b_ref[...]
    o_ref[...] = y
    s = jnp.sum(y, axis=0, keepdims=True)                  # (1, N1)
    sq = jnp.sum(y * y, axis=0, keepdims=True)
    stats_ref[...] = jnp.concatenate(
        [jnp.dot(s, g_ref[...], preferred_element_type=jnp.float32),
         jnp.dot(sq, g_ref[...], preferred_element_type=jnp.float32)], axis=0)


def _conv_kernel(x_ref, scale_ref, shift_ref, r_ref, t_ref, *rest,
                 with_stats, input_lrelu, output_lrelu, slope):
    # One batch image per grid step.
    #   x_ref    : (1, H_in, W_in*C_in)  f32   low-resolution input feature map
    #   scale/shift : (1, W_in*C_in)     f32   per-channel BN affine, tiled over w
    #   r_ref    : (3*H_out, H_in)       bf16  row selection (upsample + row tap + pad)
    #   t_ref    : (3*W_in*C_in, W_out*C_out) bf16 column Toeplitz (upsample+taps+weights)
    #   g_ref    : (W_out*C_out, C_out)  f32   channel-grouping matrix for BN stats
    if with_stats:
        g_ref, o_ref, stats_ref = rest
    else:
        (o_ref,) = rest

    h_out = o_ref.shape[-2]
    wo_co = o_ref.shape[-1]
    wc_in = x_ref.shape[-1]

    # BN affine (+ optional LeakyReLU) on the resident input tile (exact BN "fold").
    x = x_ref[0] * scale_ref[...] + shift_ref[...]
    if input_lrelu:
        x = jnp.where(x >= 0, x, x * slope)
    xb = x.astype(jnp.bfloat16)                            # bf16 matmul operands

    acc = jnp.zeros((h_out, wo_co), jnp.float32)
    for dh in range(3):                                    # 3 row taps, unrolled
        rows = jnp.dot(r_ref[pl.ds(dh * h_out, h_out), :], xb,
                       preferred_element_type=jnp.float32).astype(jnp.bfloat16)
        acc = acc + jnp.dot(rows, t_ref[pl.ds(dh * wc_in, wc_in), :],
                            preferred_element_type=jnp.float32)

    if with_stats:
        # Per-channel (sum, sum-sq) of the raw conv output (pre-activation), per batch.
        s = jnp.sum(acc, axis=0, keepdims=True)
        sq = jnp.sum(acc * acc, axis=0, keepdims=True)
        stats_ref[0] = jnp.concatenate(
            [jnp.dot(s, g_ref[...], preferred_element_type=jnp.float32),
             jnp.dot(sq, g_ref[...], preferred_element_type=jnp.float32)], axis=0)

    if output_lrelu:
        acc = jnp.where(acc >= 0, acc, acc * slope)
    o_ref[0] = acc


# ----------------------------------------------------------------------- call wrappers
def l1_layer(emb, w1p, b1p, g1):
    B, nz = emb.shape
    N1 = w1p.shape[1]
    C1 = g1.shape[1]
    flops = 2 * B * nz * N1
    bytes_acc = 4 * (B * nz + nz * N1 + N1 + N1 * C1 + B * N1 + 2 * C1)
    return pl.pallas_call(
        _l1_kernel,
        grid=(1,),
        in_specs=[pl.BlockSpec((B, nz), lambda i: (0, 0)),
                  pl.BlockSpec((nz, N1), lambda i: (0, 0)),
                  pl.BlockSpec((1, N1), lambda i: (0, 0)),
                  pl.BlockSpec((N1, C1), lambda i: (0, 0))],
        out_specs=(pl.BlockSpec((B, N1), lambda i: (0, 0)),
                   pl.BlockSpec((2, C1), lambda i: (0, 0))),
        out_shape=(jax.ShapeDtypeStruct((B, N1), jnp.float32),
                   jax.ShapeDtypeStruct((2, C1), jnp.float32)),
        compiler_params=pltpu.CompilerParams(dimension_semantics=("arbitrary",)),
        cost_estimate=pl.CostEstimate(flops=flops, transcendentals=0,
                                      bytes_accessed=bytes_acc),
    )(emb, w1p, b1p, g1)


def fused_conv_layer(x, scale_c, shift_c, layer, *, input_lrelu, output_lrelu,
                     with_stats, slope=0.2):
    """Fused [BN affine (+lrelu)] -> [optional 2x upsample + 3x3 conv] (+lrelu, +BN stats)."""
    B, H_in, WC_in = x.shape
    C_in = scale_c.shape[-1]
    W_in = WC_in // C_in
    r, t = layer["r"], layer["t"]
    H_out = r.shape[0] // 3
    WoCo = t.shape[1]

    # Per-channel BN affine tiled over w so it broadcasts over the (w, c) lane layout.
    scale_t = jnp.tile(scale_c.astype(jnp.float32), (1, W_in))
    shift_t = jnp.tile(shift_c.astype(jnp.float32), (1, W_in))

    kern = functools.partial(_conv_kernel, with_stats=with_stats,
                             input_lrelu=input_lrelu, output_lrelu=output_lrelu,
                             slope=slope)

    in_specs = [
        pl.BlockSpec((1, H_in, WC_in), lambda b: (b, 0, 0)),
        pl.BlockSpec((1, WC_in), lambda b: (0, 0)),
        pl.BlockSpec((1, WC_in), lambda b: (0, 0)),
        pl.BlockSpec((3 * H_out, H_in), lambda b: (0, 0)),
        pl.BlockSpec((3 * WC_in, WoCo), lambda b: (0, 0)),
    ]
    args = [x, scale_t, shift_t, r, t]
    out_shape = [jax.ShapeDtypeStruct((B, H_out, WoCo), jnp.float32)]
    out_specs = [pl.BlockSpec((1, H_out, WoCo), lambda b: (b, 0, 0))]
    if with_stats:
        g = layer["g"]
        c_out = g.shape[1]
        in_specs.append(pl.BlockSpec((WoCo, c_out), lambda b: (0, 0)))
        args.append(g)
        out_shape.append(jax.ShapeDtypeStruct((B, 2, c_out), jnp.float32))
        out_specs.append(pl.BlockSpec((1, 2, c_out), lambda b: (b, 0, 0)))

    # Accurate-ish scheduler hint (x read once, small constant matrices re-read per step).
    flops = B * 2 * 3 * H_out * (H_in * WC_in + WC_in * WoCo)
    bytes_acc = int(4 * B * H_in * WC_in + 4 * B * H_out * WoCo
                    + B * (8 * WC_in + 2 * r.size + 2 * t.size)
                    + (B * (4 * args[-1].size + 8 * out_shape[-1].shape[-1])
                       if with_stats else 0))

    result = pl.pallas_call(
        kern,
        grid=(B,),
        in_specs=in_specs,
        out_specs=tuple(out_specs) if with_stats else out_specs[0],
        out_shape=tuple(out_shape) if with_stats else out_shape[0],
        compiler_params=pltpu.CompilerParams(dimension_semantics=("parallel",)),
        cost_estimate=pl.CostEstimate(flops=flops, transcendentals=0,
                                      bytes_accessed=bytes_acc),
    )(*args)
    return result


# -------------------------------------------------------------- BN stats finalization
def _bn_scale_shift(stats, count, eps):
    # stats: (2, C) or (B, 2, C) of per-(batch-)channel (sum, sum-sq).
    # TODO(synk): E[x^2]-E[x]^2 in f32 is fine at this scale; switch to a centered /
    # Welford pass if the network is scaled up or fed strongly non-centered inputs.
    if stats.ndim == 3:
        stats = jnp.sum(stats, axis=0)
    mean = stats[0] / count
    var = stats[1] / count - mean * mean
    inv = jax.lax.rsqrt(var + eps)
    return inv.reshape(1, -1), (-mean * inv).reshape(1, -1)


# ----------------------------------------------------- parameter / matrix preparation
def _build_row_mat(h_in, upsample):
    h_out = h_in * (2 if upsample else 1)
    r = np.zeros((3 * h_out, h_in), np.float32)
    for dh in range(3):
        for h in range(h_out):
            u = h + dh - 1                      # row index in the (upsampled) image
            if 0 <= u < h_out:
                r[dh * h_out + h, (u // 2) if upsample else u] = 1.0
    return r


def _build_col_toeplitz(w_oihw, w_in, upsample):
    c_out, c_in, _, _ = w_oihw.shape
    w_out = w_in * (2 if upsample else 1)
    t = np.zeros((3, w_in * c_in, w_out * c_out), np.float32)
    for dh in range(3):
        for w2 in range(w_out):
            for dw in range(3):
                v = w2 + dw - 1                 # column index in the (upsampled) image
                if not (0 <= v < w_out):
                    continue
                src = (v // 2) if upsample else v
                t[dh, src * c_in:(src + 1) * c_in, w2 * c_out:(w2 + 1) * c_out] += \
                    w_oihw[:, :, dh, dw].T
    return t.reshape(3 * w_in * c_in, w_out * c_out)


def prepare_params(params, *, ngf, nc, img_size):
    """One-time host-side fold of weights into matmul-friendly (bf16) matrices."""
    init = img_size // 4
    c1 = ngf * 2

    w1 = np.asarray(params["l1_w"], np.float32)          # (C1*init*init, nz)
    b1 = np.asarray(params["l1_b"], np.float32)
    nz = w1.shape[1]
    # Permute l1 output columns from (c, h, w) to (h, w, c) so the feature map comes
    # out directly in the lane-dense NHWC-flat working layout.
    w1p = w1.reshape(c1, init, init, nz).transpose(1, 2, 0, 3).reshape(init * init * c1, nz).T
    b1p = b1.reshape(c1, init, init).transpose(1, 2, 0).reshape(1, init * init * c1)
    g1 = np.tile(np.eye(c1, dtype=np.float32), (init * init, 1))

    def conv_prep(w, h_in, w_in, upsample, need_g):
        w = np.asarray(w, np.float32)
        c_out = w.shape[0]
        d = {"r": jnp.asarray(_build_row_mat(h_in, upsample), jnp.bfloat16),
             "t": jnp.asarray(_build_col_toeplitz(w, w_in, upsample), jnp.bfloat16)}
        if need_g:
            w_out = w_in * (2 if upsample else 1)
            d["g"] = jnp.asarray(np.tile(np.eye(c_out, dtype=np.float32), (w_out, 1)))
        return d

    return {
        "w1p": jnp.asarray(w1p), "b1p": jnp.asarray(b1p), "g1": jnp.asarray(g1),
        "conv1": conv_prep(params["conv1_w"], init, init, True, True),
        "conv2": conv_prep(params["conv2_w"], 2 * init, 2 * init, True, True),
        "conv3": conv_prep(params["conv3_w"], img_size, img_size, False, False),
    }


# ---------------------------------------------------------------------------- forward
def prompt_generator_forward(task_embedding, prep, *, ngf, nc, img_size, eps=1e-5):
    B = task_embedding.shape[0]
    init = img_size // 4
    c1 = ngf * 2

    # l1 (+ fused BN1 stats)
    out0, st1 = l1_layer(task_embedding, prep["w1p"], prep["b1p"], prep["g1"])
    x0 = out0.reshape(B, init, init * c1)                 # (B, H, W*C) working layout

    sc1, sh1 = _bn_scale_shift(st1, B * init * init, eps)
    # conv1 = BN1 -> upsample -> conv ; fused BN2 stats
    x1, st2 = fused_conv_layer(x0, sc1, sh1, prep["conv1"],
                               input_lrelu=False, output_lrelu=False, with_stats=True)

    sc2, sh2 = _bn_scale_shift(st2, B * (2 * init) * (2 * init), eps)
    # conv2 = BN2 -> LeakyReLU -> upsample -> conv ; fused BN3 stats
    x2, st3 = fused_conv_layer(x1, sc2, sh2, prep["conv2"],
                               input_lrelu=True, output_lrelu=False, with_stats=True)

    sc3, sh3 = _bn_scale_shift(st3, B * img_size * img_size, eps)
    # conv3 = BN3 -> LeakyReLU -> conv -> LeakyReLU
    x3 = fused_conv_layer(x2, sc3, sh3, prep["conv3"],
                          input_lrelu=True, output_lrelu=True, with_stats=False)

    # Final NCHW conversion (required output format; tiny, pure data movement).
    return x3.reshape(B, img_size, img_size, nc).transpose(0, 3, 1, 2)


# -------------------------------------------------------------------- pure-JAX reference
def reference_forward(task_embedding, params, *, ngf, nc, img_size, eps=1e-5):
    B = task_embedding.shape[0]
    init = img_size // 4
    c1 = ngf * 2
    hi = jax.lax.Precision.HIGHEST

    def bn(z):
        m = z.mean(axis=(0, 2, 3), keepdims=True)
        v = z.var(axis=(0, 2, 3), keepdims=True)
        return (z - m) / jnp.sqrt(v + eps)

    def lrelu(z, s=0.2):
        return jnp.where(z >= 0, z, s * z)

    def up(z):
        z = jnp.repeat(z, 2, axis=2)
        return jnp.repeat(z, 2, axis=3)

    def conv(z, w):
        return jax.lax.conv_general_dilated(
            z, w, window_strides=(1, 1), padding=((1, 1), (1, 1)),
            dimension_numbers=("NCHW", "OIHW", "NCHW"), precision=hi)

    y = jnp.matmul(task_embedding, params["l1_w"].T, precision=hi) + params["l1_b"]
    y = y.reshape(B, c1, init, init)
    y = bn(y)
    y = up(y)
    y = conv(y, params["conv1_w"])
    y = lrelu(bn(y))
    y = up(y)
    y = conv(y, params["conv2_w"])
    y = lrelu(bn(y))
    y = conv(y, params["conv3_w"])
    return lrelu(y)


# ------------------------------------------------------------------------------- init
def xavier_uniform(key, shape, fan_in, fan_out, dtype=jnp.float32):
    bound = (6.0 / (fan_in + fan_out)) ** 0.5
    return jax.random.uniform(key, shape, dtype=dtype, minval=-bound, maxval=bound)


if __name__ == "__main__":
    # Small config consistent with PromptGenerator(nz, ngf, img_size, nc).
    nz, ngf, nc, img_size, batch = 32, 8, 3, 16, 2
    init = img_size // 4
    c1 = ngf * 2
    n1 = c1 * init * init

    key = jax.random.PRNGKey(0)
    k0, k1, k2, k3, k4 = jax.random.split(key, 5)

    task_embedding = jax.random.normal(k0, (batch, nz), dtype=jnp.float32)
    params = {
        "l1_w": xavier_uniform(k1, (n1, nz), nz, n1),                  # (out, in)
        "l1_b": jnp.zeros((n1,), dtype=jnp.float32),
        "conv1_w": xavier_uniform(k2, (c1, c1, 3, 3), c1 * 9, c1 * 9),
        "conv2_w": xavier_uniform(k3, (ngf, c1, 3, 3), c1 * 9, ngf * 9),
        "conv3_w": xavier_uniform(k4, (nc, ngf, 3, 3), ngf * 9, nc * 9),
    }

    prep = prepare_params(params, ngf=ngf, nc=nc, img_size=img_size)
    fwd = jax.jit(functools.partial(prompt_generator_forward,
                                    ngf=ngf, nc=nc, img_size=img_size))
    out = jax.block_until_ready(fwd(task_embedding, prep))

    ref = reference_forward(task_embedding, params, ngf=ngf, nc=nc, img_size=img_size)
    assert out.shape == (batch, nc, img_size, img_size)
    # bf16 conv-matmul operands (per performance review) introduce <~1% relative
    # deviation vs. the f32 reference.
    err = float(jnp.max(jnp.abs(out - ref)))
    assert err < 6e-2, f"max abs error {err}"

    print("KERNEL_OK")
</pallas_src>

<mosaic_0001>
module attributes {stable_mosaic.version = 11 : i64} {
  func.func @_l1_kernel(%arg0: i32, %arg1: memref<2x32xf32, #tpu.memory_space<vmem>>, %arg2: memref<32x256xf32, #tpu.memory_space<vmem>>, %arg3: memref<1x256xf32, #tpu.memory_space<vmem>>, %arg4: memref<256x16xf32, #tpu.memory_space<vmem>>, %arg5: memref<2x256xf32, #tpu.memory_space<vmem>>, %arg6: memref<2x16xf32, #tpu.memory_space<vmem>>) attributes {dimension_semantics = [#tpu.dimension_semantics<arbitrary>], iteration_bounds = array<i64: 1>, scalar_prefetch = 0 : i64, scratch_operands = 0 : i64, tpu.core_type = #tpu.core_type<tc>, window_params = [{pipeline_mode = #tpu.pipeline_mode<synchronous>, transform_indices = @transform_0, window_bounds = array<i64: 2, 32>}, {pipeline_mode = #tpu.pipeline_mode<synchronous>, transform_indices = @transform_1, window_bounds = array<i64: 32, 256>}, {pipeline_mode = #tpu.pipeline_mode<synchronous>, transform_indices = @transform_2, window_bounds = array<i64: 1, 256>}, {pipeline_mode = #tpu.pipeline_mode<synchronous>, transform_indices = @transform_3, window_bounds = array<i64: 256, 16>}, {pipeline_mode = #tpu.pipeline_mode<synchronous>, transform_indices = @transform_4, window_bounds = array<i64: 2, 256>}, {pipeline_mode = #tpu.pipeline_mode<synchronous>, transform_indices = @transform_5, window_bounds = array<i64: 2, 16>}]} {
    %c0 = arith.constant 0 : index
    %c0_0 = arith.constant 0 : index
    %0 = vector.load %arg1[%c0, %c0_0] : memref<2x32xf32, #tpu.memory_space<vmem>>, vector<2x32xf32>
    %c0_1 = arith.constant 0 : index
    %c0_2 = arith.constant 0 : index
    %1 = vector.load %arg2[%c0_1, %c0_2] : memref<32x256xf32, #tpu.memory_space<vmem>>, vector<32x256xf32>
    %cst = arith.constant dense<0.000000e+00> : vector<2x256xf32>
    %2 = tpu.matmul %0, %1, %cst {dimension_numbers = #tpu.dot_dimension_numbers<[1], [0], [0], [1], [0, 0, 1, 1], [], []>} : vector<2x32xf32>, vector<32x256xf32>, vector<2x256xf32> -> vector<2x256xf32>
    %c0_3 = arith.constant 0 : index
    %c0_4 = arith.constant 0 : index
    %3 = vector.load %arg3[%c0_3, %c0_4] : memref<1x256xf32, #tpu.memory_space<vmem>>, vector<1x256xf32>
    %4 = vector.broadcast %3 : vector<1x256xf32> to vector<2x256xf32>
    %5 = arith.addf %2, %4 : vector<2x256xf32>
    %c0_5 = arith.constant 0 : index
    %c0_6 = arith.constant 0 : index
    %6 = vector.load %arg5[%c0_5, %c0_6] : memref<2x256xf32, #tpu.memory_space<vmem>>, vector<2x256xf32>
    tpu.vector_store %arg5[%c0_5, %c0_6], %5 {strides = array<i32>} : memref<2x256xf32, #tpu.memory_space<vmem>>, vector<2x256xf32>,
    %cst_7 = arith.constant dense<0.000000e+00> : vector<256xf32>
    %7 = vector.multi_reduction <add>, %5, %cst_7 [0] : vector<2x256xf32> to vector<256xf32>
    %8 = vector.shape_cast %7 : vector<256xf32> to vector<1x256xf32>
    %9 = arith.mulf %5, %5 : vector<2x256xf32>
    %cst_8 = arith.constant dense<0.000000e+00> : vector<256xf32>
    %10 = vector.multi_reduction <add>, %9, %cst_8 [0] : vector<2x256xf32> to vector<256xf32>
    %11 = vector.shape_cast %10 : vector<256xf32> to vector<1x256xf32>
    %c0_9 = arith.constant 0 : index
    %c0_10 = arith.constant 0 : index
    %12 = vector.load %arg4[%c0_9, %c0_10] : memref<256x16xf32, #tpu.memory_space<vmem>>, vector<256x16xf32>
    %cst_11 = arith.constant dense<0.000000e+00> : vector<1x16xf32>
    %13 = tpu.matmul %8, %12, %cst_11 {dimension_numbers = #tpu.dot_dimension_numbers<[1], [0], [0], [1], [0, 0, 1, 1], [], []>} : vector<1x256xf32>, vector<256x16xf32>, vector<1x16xf32> -> vector<1x16xf32>
    %c0_12 = arith.constant 0 : index
    %c0_13 = arith.constant 0 : index
    %14 = vector.load %arg4[%c0_12, %c0_13] : memref<256x16xf32, #tpu.memory_space<vmem>>, vector<256x16xf32>
    %cst_14 = arith.constant dense<0.000000e+00> : vector<1x16xf32>
    %15 = tpu.matmul %11, %14, %cst_14 {dimension_numbers = #tpu.dot_dimension_numbers<[1], [0], [0], [1], [0, 0, 1, 1], [], []>} : vector<1x256xf32>, vector<256x16xf32>, vector<1x16xf32> -> vector<1x16xf32>
    %16 = tpu.concatenate %13, %15 in 0 : vector<1x16xf32>, vector<1x16xf32> -> vector<2x16xf32>
    %c0_15 = arith.constant 0 : index
    %c0_16 = arith.constant 0 : index
    %17 = vector.load %arg6[%c0_15, %c0_16] : memref<2x16xf32, #tpu.memory_space<vmem>>, vector<2x16xf32>
    tpu.vector_store %arg6[%c0_15, %c0_16], %16 {strides = array<i32>} : memref<2x16xf32, #tpu.memory_space<vmem>>, vector<2x16xf32>,
    return
  }
  func.func @transform_0(%arg0: i32) -> (i32, i32) {
    %c0_i32 = arith.constant 0 : i32
    %c0_i32_0 = arith.constant 0 : i32
    %c0_i32_1 = arith.constant 0 : i32
    return %c0_i32, %c0_i32_0 : i32, i32
  }
  func.func @transform_1(%arg0: i32) -> (i32, i32) {
    %c0_i32 = arith.constant 0 : i32
    %c0_i32_0 = arith.constant 0 : i32
    %c0_i32_1 = arith.constant 0 : i32
    return %c0_i32, %c0_i32_0 : i32, i32
  }
  func.func @transform_2(%arg0: i32) -> (i32, i32) {
    %c0_i32 = arith.constant 0 : i32
    %c0_i32_0 = arith.constant 0 : i32
    %c0_i32_1 = arith.constant 0 : i32
    return %c0_i32, %c0_i32_0 : i32, i32
  }
  func.func @transform_3(%arg0: i32) -> (i32, i32) {
    %c0_i32 = arith.constant 0 : i32
    %c0_i32_0 = arith.constant 0 : i32
    %c0_i32_1 = arith.constant 0 : i32
    return %c0_i32, %c0_i32_0 : i32, i32
  }
  func.func @transform_4(%arg0: i32) -> (i32, i32) {
    %c0_i32 = arith.constant 0 : i32
    %c0_i32_0 = arith.constant 0 : i32
    %c0_i32_1 = arith.constant 0 : i32
    return %c0_i32, %c0_i32_0 : i32, i32
  }
  func.func @transform_5(%arg0: i32) -> (i32, i32) {
    %c0_i32 = arith.constant 0 : i32
    %c0_i32_0 = arith.constant 0 : i32
    %c0_i32_1 = arith.constant 0 : i32
    return %c0_i32, %c0_i32_0 : i32, i32
  }
}

module attributes {stable_mosaic.version = 11 : i64} {
  func.func @_conv_kernel(%arg0: i32, %arg1: memref<1x8x128xf32, #tpu.memory_space<vmem>>, %arg2: memref<1x128xf32, #tpu.memory_space<vmem>>, %arg3: memref<1x128xf32, #tpu.memory_space<vmem>>, %arg4: memref<48x8xbf16, #tpu.memory_space<vmem>>, %arg5: memref<384x128xbf16, #tpu.memory_space<vmem>>, %arg6: memref<128x8xf32, #tpu.memory_space<vmem>>, %arg7: memref<1x16x128xf32, #tpu.memory_space<vmem>>, %arg8: memref<1x2x8xf32, #tpu.memory_space<vmem>>) attributes {dimension_semantics = [#tpu.dimension_semantics<parallel>], iteration_bounds = array<i64: 2>, scalar_prefetch = 0 : i64, scratch_operands = 0 : i64, tpu.core_type = #tpu.core_type<tc>, window_params = [{transform_indices = @transform_0, window_bounds = array<i64: 1, 8, 128>}, {pipeline_mode = #tpu.pipeline_mode<synchronous>, transform_indices = @transform_1, window_bounds = array<i64: 1, 128>}, {pipeline_mode = #tpu.pipeline_mode<synchronous>, transform_indices = @transform_2, window_bounds = array<i64: 1, 128>}, {pipeline_mode = #tpu.pipeline_mode<synchronous>, transform_indices = @transform_3, window_bounds = array<i64: 48, 8>}, {pipeline_mode = #tpu.pipeline_mode<synchronous>, transform_indices = @transform_4, window_bounds = array<i64: 384, 128>}, {pipeline_mode = #tpu.pipeline_mode<synchronous>, transform_indices = @transform_5, window_bounds = array<i64: 128, 8>}, {transform_indices = @transform_6, window_bounds = array<i64: 1, 16, 128>}, {transform_indices = @transform_7, window_bounds = array<i64: 1, 2, 8>}]} {
    %c0 = arith.constant 0 : index
    %c0_0 = arith.constant 0 : index
    %c0_1 = arith.constant 0 : index
    %0 = vector.load %arg1[%c0, %c0_0, %c0_1] : memref<1x8x128xf32, #tpu.memory_space<vmem>>, vector<1x8x128xf32>
    %1 = vector.shape_cast %0 : vector<1x8x128xf32> to vector<8x128xf32>
    %c0_2 = arith.constant 0 : index
    %c0_3 = arith.constant 0 : index
    %2 = vector.load %arg2[%c0_2, %c0_3] : memref<1x128xf32, #tpu.memory_space<vmem>>, vector<1x128xf32>
    %3 = vector.broadcast %2 : vector<1x128xf32> to vector<8x128xf32>
    %4 = arith.mulf %1, %3 : vector<8x128xf32>
    %c0_4 = arith.constant 0 : index
    %c0_5 = arith.constant 0 : index
    %5 = vector.load %arg3[%c0_4, %c0_5] : memref<1x128xf32, #tpu.memory_space<vmem>>, vector<1x128xf32>
    %6 = vector.broadcast %5 : vector<1x128xf32> to vector<8x128xf32>
    %7 = arith.addf %4, %6 : vector<8x128xf32>
    %cst = arith.constant 0.000000e+00 : f32
    %8 = vector.broadcast %cst : f32 to vector<8x128xf32>
    %9 = arith.cmpf oge, %7, %8 : vector<8x128xf32>
    %cst_6 = arith.constant 2.000000e-01 : f32
    %10 = vector.broadcast %cst_6 : f32 to vector<8x128xf32>
    %11 = arith.mulf %7, %10 : vector<8x128xf32>
    %12 = arith.select %9, %7, %11 : vector<8x128xi1>, vector<8x128xf32>
    %13 = arith.truncf %12 : vector<8x128xf32> to vector<8x128xbf16>
    %cst_7 = arith.constant 0.000000e+00 : f32
    %14 = vector.broadcast %cst_7 : f32 to vector<16x128xf32>
    %c0_8 = arith.constant 0 : index
    %c0_9 = arith.constant 0 : index
    %15 = vector.load %arg4[%c0_8, %c0_9] : memref<48x8xbf16, #tpu.memory_space<vmem>>, vector<16x8xbf16>
    %cst_10 = arith.constant dense<0.000000e+00> : vector<16x128xf32>
    %16 = tpu.matmul %15, %13, %cst_10 {dimension_numbers = #tpu.dot_dimension_numbers<[1], [0], [0], [1], [0, 0, 1, 1], [], []>} : vector<16x8xbf16>, vector<8x128xbf16>, vector<16x128xf32> -> vector<16x128xf32>
    %17 = arith.truncf %16 : vector<16x128xf32> to vector<16x128xbf16>
    %c0_11 = arith.constant 0 : index
    %c0_12 = arith.constant 0 : index
    %18 = vector.load %arg5[%c0_11, %c0_12] : memref<384x128xbf16, #tpu.memory_space<vmem>>, vector<128x128xbf16>
    %cst_13 = arith.constant dense<0.000000e+00> : vector<16x128xf32>
    %19 = tpu.matmul %17, %18, %cst_13 {dimension_numbers = #tpu.dot_dimension_numbers<[1], [0], [0], [1], [0, 0, 1, 1], [], []>} : vector<16x128xbf16>, vector<128x128xbf16>, vector<16x128xf32> -> vector<16x128xf32>
    %20 = arith.addf %14, %19 : vector<16x128xf32>
    %c16 = arith.constant 16 : index
    %c0_14 = arith.constant 0 : index
    %21 = vector.load %arg4[%c16, %c0_14] : memref<48x8xbf16, #tpu.memory_space<vmem>>, vector<16x8xbf16>
    %cst_15 = arith.constant dense<0.000000e+00> : vector<16x128xf32>
    %22 = tpu.matmul %21, %13, %cst_15 {dimension_numbers = #tpu.dot_dimension_numbers<[1], [0], [0], [1], [0, 0, 1, 1], [], []>} : vector<16x8xbf16>, vector<8x128xbf16>, vector<16x128xf32> -> vector<16x128xf32>
    %23 = arith.truncf %22 : vector<16x128xf32> to vector<16x128xbf16>
    %c128 = arith.constant 128 : index
    %c0_16 = arith.constant 0 : index
    %24 = vector.load %arg5[%c128, %c0_16] : memref<384x128xbf16, #tpu.memory_space<vmem>>, vector<128x128xbf16>
    %cst_17 = arith.constant dense<0.000000e+00> : vector<16x128xf32>
    %25 = tpu.matmul %23, %24, %cst_17 {dimension_numbers = #tpu.dot_dimension_numbers<[1], [0], [0], [1], [0, 0, 1, 1], [], []>} : vector<16x128xbf16>, vector<128x128xbf16>, vector<16x128xf32> -> vector<16x128xf32>
    %26 = arith.addf %20, %25 : vector<16x128xf32>
    %c32 = arith.constant 32 : index
    %c0_18 = arith.constant 0 : index
    %27 = vector.load %arg4[%c32, %c0_18] : memref<48x8xbf16, #tpu.memory_space<vmem>>, vector<16x8xbf16>
    %cst_19 = arith.constant dense<0.000000e+00> : vector<16x128xf32>
    %28 = tpu.matmul %27, %13, %cst_19 {dimension_numbers = #tpu.dot_dimension_numbers<[1], [0], [0], [1], [0, 0, 1, 1], [], []>} : vector<16x8xbf16>, vector<8x128xbf16>, vector<16x128xf32> -> vector<16x128xf32>
    %29 = arith.truncf %28 : vector<16x128xf32> to vector<16x128xbf16>
    %c256 = arith.constant 256 : index
    %c0_20 = arith.constant 0 : index
    %30 = vector.load %arg5[%c256, %c0_20] : memref<384x128xbf16, #tpu.memory_space<vmem>>, vector<128x128xbf16>
    %cst_21 = arith.constant dense<0.000000e+00> : vector<16x128xf32>
    %31 = tpu.matmul %29, %30, %cst_21 {dimension_numbers = #tpu.dot_dimension_numbers<[1], [0], [0], [1], [0, 0, 1, 1], [], []>} : vector<16x128xbf16>, vector<128x128xbf16>, vector<16x128xf32> -> vector<16x128xf32>
    %32 = arith.addf %26, %31 : vector<16x128xf32>
    %cst_22 = arith.constant dense<0.000000e+00> : vector<128xf32>
    %33 = vector.multi_reduction <add>, %32, %cst_22 [0] : vector<16x128xf32> to vector<128xf32>
    %34 = vector.shape_cast %33 : vector<128xf32> to vector<1x128xf32>
    %35 = arith.mulf %32, %32 : vector<16x128xf32>
    %cst_23 = arith.constant dense<0.000000e+00> : vector<128xf32>
    %36 = vector.multi_reduction <add>, %35, %cst_23 [0] : vector<16x128xf32> to vector<128xf32>
    %37 = vector.shape_cast %36 : vector<128xf32> to vector<1x128xf32>
    %c0_24 = arith.constant 0 : index
    %c0_25 = arith.constant 0 : index
    %38 = vector.load %arg6[%c0_24, %c0_25] : memref<128x8xf32, #tpu.memory_space<vmem>>, vector<128x8xf32>
    %cst_26 = arith.constant dense<0.000000e+00> : vector<1x8xf32>
    %39 = tpu.matmul %34, %38, %cst_26 {dimension_numbers = #tpu.dot_dimension_numbers<[1], [0], [0], [1], [0, 0, 1, 1], [], []>} : vector<1x128xf32>, vector<128x8xf32>, vector<1x8xf32> -> vector<1x8xf32>
    %c0_27 = arith.constant 0 : index
    %c0_28 = arith.constant 0 : index
    %40 = vector.load %arg6[%c0_27, %c0_28] : memref<128x8xf32, #tpu.memory_space<vmem>>, vector<128x8xf32>
    %cst_29 = arith.constant dense<0.000000e+00> : vector<1x8xf32>
    %41 = tpu.matmul %37, %40, %cst_29 {dimension_numbers = #tpu.dot_dimension_numbers<[1], [0], [0], [1], [0, 0, 1, 1], [], []>} : vector<1x128xf32>, vector<128x8xf32>, vector<1x8xf32> -> vector<1x8xf32>
    %42 = tpu.concatenate %39, %41 in 0 : vector<1x8xf32>, vector<1x8xf32> -> vector<2x8xf32>
    %c0_30 = arith.constant 0 : index
    %c0_31 = arith.constant 0 : index
    %c0_32 = arith.constant 0 : index
    %43 = vector.load %arg8[%c0_30, %c0_31, %c0_32] : memref<1x2x8xf32, #tpu.memory_space<vmem>>, vector<1x2x8xf32>
    %44 = vector.shape_cast %43 : vector<1x2x8xf32> to vector<2x8xf32>
    %45 = vector.shape_cast %42 : vector<2x8xf32> to vector<1x2x8xf32>
    tpu.vector_store %arg8[%c0_30, %c0_31, %c0_32], %45 {strides = array<i32>} : memref<1x2x8xf32, #tpu.memory_space<vmem>>, vector<1x2x8xf32>,
    %c0_33 = arith.constant 0 : index
    %c0_34 = arith.constant 0 : index
    %c0_35 = arith.constant 0 : index
    %46 = vector.load %arg7[%c0_33, %c0_34, %c0_35] : memref<1x16x128xf32, #tpu.memory_space<vmem>>, vector<1x16x128xf32>
    %47 = vector.shape_cast %46 : vector<1x16x128xf32> to vector<16x128xf32>
    %48 = vector.shape_cast %32 : vector<16x128xf32> to vector<1x16x128xf32>
    tpu.vector_store %arg7[%c0_33, %c0_34, %c0_35], %48 {strides = array<i32>} : memref<1x16x128xf32, #tpu.memory_space<vmem>>, vector<1x16x128xf32>,
    return
  }
  func.func @transform_0(%arg0: i32) -> (i32, i32, i32) {
    %c0_i32 = arith.constant 0 : i32
    %c0_i32_0 = arith.constant 0 : i32
    %c0_i32_1 = arith.constant 0 : i32
    return %arg0, %c0_i32, %c0_i32_0 : i32, i32, i32
  }
  func.func @transform_1(%arg0: i32) -> (i32, i32) {
    %c0_i32 = arith.constant 0 : i32
    %c0_i32_0 = arith.constant 0 : i32
    %c0_i32_1 = arith.constant 0 : i32
    return %c0_i32, %c0_i32_0 : i32, i32
  }
  func.func @transform_2(%arg0: i32) -> (i32, i32) {
    %c0_i32 = arith.constant 0 : i32
    %c0_i32_0 = arith.constant 0 : i32
    %c0_i32_1 = arith.constant 0 : i32
    return %c0_i32, %c0_i32_0 : i32, i32
  }
  func.func @transform_3(%arg0: i32) -> (i32, i32) {
    %c0_i32 = arith.constant 0 : i32
    %c0_i32_0 = arith.constant 0 : i32
    %c0_i32_1 = arith.constant 0 : i32
    return %c0_i32, %c0_i32_0 : i32, i32
  }
  func.func @transform_4(%arg0: i32) -> (i32, i32) {
    %c0_i32 = arith.constant 0 : i32
    %c0_i32_0 = arith.constant 0 : i32
    %c0_i32_1 = arith.constant 0 : i32
    return %c0_i32, %c0_i32_0 : i32, i32
  }
  func.func @transform_5(%arg0: i32) -> (i32, i32) {
    %c0_i32 = arith.constant 0 : i32
    %c0_i32_0 = arith.constant 0 : i32
    %c0_i32_1 = arith.constant 0 : i32
    return %c0_i32, %c0_i32_0 : i32, i32
  }
  func.func @transform_6(%arg0: i32) -> (i32, i32, i32) {
    %c0_i32 = arith.constant 0 : i32
    %c0_i32_0 = arith.constant 0 : i32
    %c0_i32_1 = arith.constant 0 : i32
    return %arg0, %c0_i32, %c0_i32_0 : i32, i32, i32
  }
  func.func @transform_7(%arg0: i32) -> (i32, i32, i32) {
    %c0_i32 = arith.constant 0 : i32
    %c0_i32_0 = arith.constant 0 : i32
    %c0_i32_1 = arith.constant 0 : i32
    return %arg0, %c0_i32, %c0_i32_0 : i32, i32, i32
  }
}

module attributes {stable_mosaic.version = 11 : i64} {
  func.func @_conv_kernel(%arg0: i32, %arg1: memref<1x4x64xf32, #tpu.memory_space<vmem>>, %arg2: memref<1x64xf32, #tpu.memory_space<vmem>>, %arg3: memref<1x64xf32, #tpu.memory_space<vmem>>, %arg4: memref<24x4xbf16, #tpu.memory_space<vmem>>, %arg5: memref<192x128xbf16, #tpu.memory_space<vmem>>, %arg6: memref<128x16xf32, #tpu.memory_space<vmem>>, %arg7: memref<1x8x128xf32, #tpu.memory_space<vmem>>, %arg8: memref<1x2x16xf32, #tpu.memory_space<vmem>>) attributes {dimension_semantics = [#tpu.dimension_semantics<parallel>], iteration_bounds = array<i64: 2>, scalar_prefetch = 0 : i64, scratch_operands = 0 : i64, tpu.core_type = #tpu.core_type<tc>, window_params = [{transform_indices = @transform_0, window_bounds = array<i64: 1, 4, 64>}, {pipeline_mode = #tpu.pipeline_mode<synchronous>, transform_indices = @transform_1, window_bounds = array<i64: 1, 64>}, {pipeline_mode = #tpu.pipeline_mode<synchronous>, transform_indices = @transform_2, window_bounds = array<i64: 1, 64>}, {pipeline_mode = #tpu.pipeline_mode<synchronous>, transform_indices = @transform_3, window_bounds = array<i64: 24, 4>}, {pipeline_mode = #tpu.pipeline_mode<synchronous>, transform_indices = @transform_4, window_bounds = array<i64: 192, 128>}, {pipeline_mode = #tpu.pipeline_mode<synchronous>, transform_indices = @transform_5, window_bounds = array<i64: 128, 16>}, {transform_indices = @transform_6, window_bounds = array<i64: 1, 8, 128>}, {transform_indices = @transform_7, window_bounds = array<i64: 1, 2, 16>}]} {
    %c0 = arith.constant 0 : index
    %c0_0 = arith.constant 0 : index
    %c0_1 = arith.constant 0 : index
    %0 = vector.load %arg1[%c0, %c0_0, %c0_1] : memref<1x4x64xf32, #tpu.memory_space<vmem>>, vector<1x4x64xf32>
    %1 = vector.shape_cast %0 : vector<1x4x64xf32> to vector<4x64xf32>
    %c0_2 = arith.constant 0 : index
    %c0_3 = arith.constant 0 : index
    %2 = vector.load %arg2[%c0_2, %c0_3] : memref<1x64xf32, #tpu.memory_space<vmem>>, vector<1x64xf32>
    %3 = vector.broadcast %2 : vector<1x64xf32> to vector<4x64xf32>
    %4 = arith.mulf %1, %3 : vector<4x64xf32>
    %c0_4 = arith.constant 0 : index
    %c0_5 = arith.constant 0 : index
    %5 = vector.load %arg3[%c0_4, %c0_5] : memref<1x64xf32, #tpu.memory_space<vmem>>, vector<1x64xf32>
    %6 = vector.broadcast %5 : vector<1x64xf32> to vector<4x64xf32>
    %7 = arith.addf %4, %6 : vector<4x64xf32>
    %8 = arith.truncf %7 : vector<4x64xf32> to vector<4x64xbf16>
    %cst = arith.constant 0.000000e+00 : f32
    %9 = vector.broadcast %cst : f32 to vector<8x128xf32>
    %c0_6 = arith.constant 0 : index
    %c0_7 = arith.constant 0 : index
    %10 = vector.load %arg4[%c0_6, %c0_7] : memref<24x4xbf16, #tpu.memory_space<vmem>>, vector<8x4xbf16>
    %cst_8 = arith.constant dense<0.000000e+00> : vector<8x64xf32>
    %11 = tpu.matmul %10, %8, %cst_8 {dimension_numbers = #tpu.dot_dimension_numbers<[1], [0], [0], [1], [0, 0, 1, 1], [], []>} : vector<8x4xbf16>, vector<4x64xbf16>, vector<8x64xf32> -> vector<8x64xf32>
    %12 = arith.truncf %11 : vector<8x64xf32> to vector<8x64xbf16>
    %c0_9 = arith.constant 0 : index
    %c0_10 = arith.constant 0 : index
    %13 = vector.load %arg5[%c0_9, %c0_10] : memref<192x128xbf16, #tpu.memory_space<vmem>>, vector<64x128xbf16>
    %cst_11 = arith.constant dense<0.000000e+00> : vector<8x128xf32>
    %14 = tpu.matmul %12, %13, %cst_11 {dimension_numbers = #tpu.dot_dimension_numbers<[1], [0], [0], [1], [0, 0, 1, 1], [], []>} : vector<8x64xbf16>, vector<64x128xbf16>, vector<8x128xf32> -> vector<8x128xf32>
    %15 = arith.addf %9, %14 : vector<8x128xf32>
    %c8 = arith.constant 8 : index
    %c0_12 = arith.constant 0 : index
    %16 = vector.load %arg4[%c8, %c0_12] : memref<24x4xbf16, #tpu.memory_space<vmem>>, vector<8x4xbf16>
    %cst_13 = arith.constant dense<0.000000e+00> : vector<8x64xf32>
    %17 = tpu.matmul %16, %8, %cst_13 {dimension_numbers = #tpu.dot_dimension_numbers<[1], [0], [0], [1], [0, 0, 1, 1], [], []>} : vector<8x4xbf16>, vector<4x64xbf16>, vector<8x64xf32> -> vector<8x64xf32>
    %18 = arith.truncf %17 : vector<8x64xf32> to vector<8x64xbf16>
    %c64 = arith.constant 64 : index
    %c0_14 = arith.constant 0 : index
    %19 = vector.load %arg5[%c64, %c0_14] : memref<192x128xbf16, #tpu.memory_space<vmem>>, vector<64x128xbf16>
    %cst_15 = arith.constant dense<0.000000e+00> : vector<8x128xf32>
    %20 = tpu.matmul %18, %19, %cst_15 {dimension_numbers = #tpu.dot_dimension_numbers<[1], [0], [0], [1], [0, 0, 1, 1], [], []>} : vector<8x64xbf16>, vector<64x128xbf16>, vector<8x128xf32> -> vector<8x128xf32>
    %21 = arith.addf %15, %20 : vector<8x128xf32>
    %c16 = arith.constant 16 : index
    %c0_16 = arith.constant 0 : index
    %22 = vector.load %arg4[%c16, %c0_16] : memref<24x4xbf16, #tpu.memory_space<vmem>>, vector<8x4xbf16>
    %cst_17 = arith.constant dense<0.000000e+00> : vector<8x64xf32>
    %23 = tpu.matmul %22, %8, %cst_17 {dimension_numbers = #tpu.dot_dimension_numbers<[1], [0], [0], [1], [0, 0, 1, 1], [], []>} : vector<8x4xbf16>, vector<4x64xbf16>, vector<8x64xf32> -> vector<8x64xf32>
    %24 = arith.truncf %23 : vector<8x64xf32> to vector<8x64xbf16>
    %c128 = arith.constant 128 : index
    %c0_18 = arith.constant 0 : index
    %25 = vector.load %arg5[%c128, %c0_18] : memref<192x128xbf16, #tpu.memory_space<vmem>>, vector<64x128xbf16>
    %cst_19 = arith.constant dense<0.000000e+00> : vector<8x128xf32>
    %26 = tpu.matmul %24, %25, %cst_19 {dimension_numbers = #tpu.dot_dimension_numbers<[1], [0], [0], [1], [0, 0, 1, 1], [], []>} : vector<8x64xbf16>, vector<64x128xbf16>, vector<8x128xf32> -> vector<8x128xf32>
    %27 = arith.addf %21, %26 : vector<8x128xf32>
    %cst_20 = arith.constant dense<0.000000e+00> : vector<128xf32>
    %28 = vector.multi_reduction <add>, %27, %cst_20 [0] : vector<8x128xf32> to vector<128xf32>
    %29 = vector.shape_cast %28 : vector<128xf32> to vector<1x128xf32>
    %30 = arith.mulf %27, %27 : vector<8x128xf32>
    %cst_21 = arith.constant dense<0.000000e+00> : vector<128xf32>
    %31 = vector.multi_reduction <add>, %30, %cst_21 [0] : vector<8x128xf32> to vector<128xf32>
    %32 = vector.shape_cast %31 : vector<128xf32> to vector<1x128xf32>
    %c0_22 = arith.constant 0 : index
    %c0_23 = arith.constant 0 : index
    %33 = vector.load %arg6[%c0_22, %c0_23] : memref<128x16xf32, #tpu.memory_space<vmem>>, vector<128x16xf32>
    %cst_24 = arith.constant dense<0.000000e+00> : vector<1x16xf32>
    %34 = tpu.matmul %29, %33, %cst_24 {dimension_numbers = #tpu.dot_dimension_numbers<[1], [0], [0], [1], [0, 0, 1, 1], [], []>} : vector<1x128xf32>, vector<128x16xf32>, vector<1x16xf32> -> vector<1x16xf32>
    %c0_25 = arith.constant 0 : index
    %c0_26 = arith.constant 0 : index
    %35 = vector.load %arg6[%c0_25, %c0_26] : memref<128x16xf32, #tpu.memory_space<vmem>>, vector<128x16xf32>
    %cst_27 = arith.constant dense<0.000000e+00> : vector<1x16xf32>
    %36 = tpu.matmul %32, %35, %cst_27 {dimension_numbers = #tpu.dot_dimension_numbers<[1], [0], [0], [1], [0, 0, 1, 1], [], []>} : vector<1x128xf32>, vector<128x16xf32>, vector<1x16xf32> -> vector<1x16xf32>
    %37 = tpu.concatenate %34, %36 in 0 : vector<1x16xf32>, vector<1x16xf32> -> vector<2x16xf32>
    %c0_28 = arith.constant 0 : index
    %c0_29 = arith.constant 0 : index
    %c0_30 = arith.constant 0 : index
    %38 = vector.load %arg8[%c0_28, %c0_29, %c0_30] : memref<1x2x16xf32, #tpu.memory_space<vmem>>, vector<1x2x16xf32>
    %39 = vector.shape_cast %38 : vector<1x2x16xf32> to vector<2x16xf32>
    %40 = vector.shape_cast %37 : vector<2x16xf32> to vector<1x2x16xf32>
    tpu.vector_store %arg8[%c0_28, %c0_29, %c0_30], %40 {strides = array<i32>} : memref<1x2x16xf32, #tpu.memory_space<vmem>>, vector<1x2x16xf32>,
    %c0_31 = arith.constant 0 : index
    %c0_32 = arith.constant 0 : index
    %c0_33 = arith.constant 0 : index
    %41 = vector.load %arg7[%c0_31, %c0_32, %c0_33] : memref<1x8x128xf32, #tpu.memory_space<vmem>>, vector<1x8x128xf32>
    %42 = vector.shape_cast %41 : vector<1x8x128xf32> to vector<8x128xf32>
    %43 = vector.shape_cast %27 : vector<8x128xf32> to vector<1x8x128xf32>
    tpu.vector_store %arg7[%c0_31, %c0_32, %c0_33], %43 {strides = array<i32>} : memref<1x8x128xf32, #tpu.memory_space<vmem>>, vector<1x8x128xf32>,
    return
  }
  func.func @transform_0(%arg0: i32) -> (i32, i32, i32) {
    %c0_i32 = arith.constant 0 : i32
    %c0_i32_0 = arith.constant 0 : i32
    %c0_i32_1 = arith.constant 0 : i32
    return %arg0, %c0_i32, %c0_i32_0 : i32, i32, i32
  }
  func.func @transform_1(%arg0: i32) -> (i32, i32) {
    %c0_i32 = arith.constant 0 : i32
    %c0_i32_0 = arith.constant 0 : i32
    %c0_i32_1 = arith.constant 0 : i32
    return %c0_i32, %c0_i32_0 : i32, i32
  }
  func.func @transform_2(%arg0: i32) -> (i32, i32) {
    %c0_i32 = arith.constant 0 : i32
    %c0_i32_0 = arith.constant 0 : i32
    %c0_i32_1 = arith.constant 0 : i32
    return %c0_i32, %c0_i32_0 : i32, i32
  }
  func.func @transform_3(%arg0: i32) -> (i32, i32) {
    %c0_i32 = arith.constant 0 : i32
    %c0_i32_0 = arith.constant 0 : i32
    %c0_i32_1 = arith.constant 0 : i32
    return %c0_i32, %c0_i32_0 : i32, i32
  }
  func.func @transform_4(%arg0: i32) -> (i32, i32) {
    %c0_i32 = arith.constant 0 : i32
    %c0_i32_0 = arith.constant 0 : i32
    %c0_i32_1 = arith.constant 0 : i32
    return %c0_i32, %c0_i32_0 : i32, i32
  }
  func.func @transform_5(%arg0: i32) -> (i32, i32) {
    %c0_i32 = arith.constant 0 : i32
    %c0_i32_0 = arith.constant 0 : i32
    %c0_i32_1 = arith.constant 0 : i32
    return %c0_i32, %c0_i32_0 : i32, i32
  }
  func.func @transform_6(%arg0: i32) -> (i32, i32, i32) {
    %c0_i32 = arith.constant 0 : i32
    %c0_i32_0 = arith.constant 0 : i32
    %c0_i32_1 = arith.constant 0 : i32
    return %arg0, %c0_i32, %c0_i32_0 : i32, i32, i32
  }
  func.func @transform_7(%arg0: i32) -> (i32, i32, i32) {
    %c0_i32 = arith.constant 0 : i32
    %c0_i32_0 = arith.constant 0 : i32
    %c0_i32_1 = arith.constant 0 : i32
    return %arg0, %c0_i32, %c0_i32_0 : i32, i32, i32
  }
}

module attributes {stable_mosaic.version = 11 : i64} {
  func.func @_conv_kernel(%arg0: i32, %arg1: memref<1x16x128xf32, #tpu.memory_space<vmem>>, %arg2: memref<1x128xf32, #tpu.memory_space<vmem>>, %arg3: memref<1x128xf32, #tpu.memory_space<vmem>>, %arg4: memref<48x16xbf16, #tpu.memory_space<vmem>>, %arg5: memref<384x48xbf16, #tpu.memory_space<vmem>>, %arg6: memref<1x16x48xf32, #tpu.memory_space<vmem>>) attributes {dimension_semantics = [#tpu.dimension_semantics<parallel>], iteration_bounds = array<i64: 2>, scalar_prefetch = 0 : i64, scratch_operands = 0 : i64, tpu.core_type = #tpu.core_type<tc>, window_params = [{transform_indices = @transform_0, window_bounds = array<i64: 1, 16, 128>}, {pipeline_mode = #tpu.pipeline_mode<synchronous>, transform_indices = @transform_1, window_bounds = array<i64: 1, 128>}, {pipeline_mode = #tpu.pipeline_mode<synchronous>, transform_indices = @transform_2, window_bounds = array<i64: 1, 128>}, {pipeline_mode = #tpu.pipeline_mode<synchronous>, transform_indices = @transform_3, window_bounds = array<i64: 48, 16>}, {pipeline_mode = #tpu.pipeline_mode<synchronous>, transform_indices = @transform_4, window_bounds = array<i64: 384, 48>}, {transform_indices = @transform_5, window_bounds = array<i64: 1, 16, 48>}]} {
    %c0 = arith.constant 0 : index
    %c0_0 = arith.constant 0 : index
    %c0_1 = arith.constant 0 : index
    %0 = vector.load %arg1[%c0, %c0_0, %c0_1] : memref<1x16x128xf32, #tpu.memory_space<vmem>>, vector<1x16x128xf32>
    %1 = vector.shape_cast %0 : vector<1x16x128xf32> to vector<16x128xf32>
    %c0_2 = arith.constant 0 : index
    %c0_3 = arith.constant 0 : index
    %2 = vector.load %arg2[%c0_2, %c0_3] : memref<1x128xf32, #tpu.memory_space<vmem>>, vector<1x128xf32>
    %3 = vector.broadcast %2 : vector<1x128xf32> to vector<16x128xf32>
    %4 = arith.mulf %1, %3 : vector<16x128xf32>
    %c0_4 = arith.constant 0 : index
    %c0_5 = arith.constant 0 : index
    %5 = vector.load %arg3[%c0_4, %c0_5] : memref<1x128xf32, #tpu.memory_space<vmem>>, vector<1x128xf32>
    %6 = vector.broadcast %5 : vector<1x128xf32> to vector<16x128xf32>
    %7 = arith.addf %4, %6 : vector<16x128xf32>
    %cst = arith.constant 0.000000e+00 : f32
    %8 = vector.broadcast %cst : f32 to vector<16x128xf32>
    %9 = arith.cmpf oge, %7, %8 : vector<16x128xf32>
    %cst_6 = arith.constant 2.000000e-01 : f32
    %10 = vector.broadcast %cst_6 : f32 to vector<16x128xf32>
    %11 = arith.mulf %7, %10 : vector<16x128xf32>
    %12 = arith.select %9, %7, %11 : vector<16x128xi1>, vector<16x128xf32>
    %13 = arith.truncf %12 : vector<16x128xf32> to vector<16x128xbf16>
    %cst_7 = arith.constant 0.000000e+00 : f32
    %14 = vector.broadcast %cst_7 : f32 to vector<16x48xf32>
    %c0_8 = arith.constant 0 : index
    %c0_9 = arith.constant 0 : index
    %15 = vector.load %arg4[%c0_8, %c0_9] : memref<48x16xbf16, #tpu.memory_space<vmem>>, vector<16x16xbf16>
    %cst_10 = arith.constant dense<0.000000e+00> : vector<16x128xf32>
    %16 = tpu.matmul %15, %13, %cst_10 {dimension_numbers = #tpu.dot_dimension_numbers<[1], [0], [0], [1], [0, 0, 1, 1], [], []>} : vector<16x16xbf16>, vector<16x128xbf16>, vector<16x128xf32> -> vector<16x128xf32>
    %17 = arith.truncf %16 : vector<16x128xf32> to vector<16x128xbf16>
    %c0_11 = arith.constant 0 : index
    %c0_12 = arith.constant 0 : index
    %18 = vector.load %arg5[%c0_11, %c0_12] : memref<384x48xbf16, #tpu.memory_space<vmem>>, vector<128x48xbf16>
    %cst_13 = arith.constant dense<0.000000e+00> : vector<16x48xf32>
    %19 = tpu.matmul %17, %18, %cst_13 {dimension_numbers = #tpu.dot_dimension_numbers<[1], [0], [0], [1], [0, 0, 1, 1], [], []>} : vector<16x128xbf16>, vector<128x48xbf16>, vector<16x48xf32> -> vector<16x48xf32>
    %20 = arith.addf %14, %19 : vector<16x48xf32>
    %c16 = arith.constant 16 : index
    %c0_14 = arith.constant 0 : index
    %21 = vector.load %arg4[%c16, %c0_14] : memref<48x16xbf16, #tpu.memory_space<vmem>>, vector<16x16xbf16>
    %cst_15 = arith.constant dense<0.000000e+00> : vector<16x128xf32>
    %22 = tpu.matmul %21, %13, %cst_15 {dimension_numbers = #tpu.dot_dimension_numbers<[1], [0], [0], [1], [0, 0, 1, 1], [], []>} : vector<16x16xbf16>, vector<16x128xbf16>, vector<16x128xf32> -> vector<16x128xf32>
    %23 = arith.truncf %22 : vector<16x128xf32> to vector<16x128xbf16>
    %c128 = arith.constant 128 : index
    %c0_16 = arith.constant 0 : index
    %24 = vector.load %arg5[%c128, %c0_16] : memref<384x48xbf16, #tpu.memory_space<vmem>>, vector<128x48xbf16>
    %cst_17 = arith.constant dense<0.000000e+00> : vector<16x48xf32>
    %25 = tpu.matmul %23, %24, %cst_17 {dimension_numbers = #tpu.dot_dimension_numbers<[1], [0], [0], [1], [0, 0, 1, 1], [], []>} : vector<16x128xbf16>, vector<128x48xbf16>, vector<16x48xf32> -> vector<16x48xf32>
    %26 = arith.addf %20, %25 : vector<16x48xf32>
    %c32 = arith.constant 32 : index
    %c0_18 = arith.constant 0 : index
    %27 = vector.load %arg4[%c32, %c0_18] : memref<48x16xbf16, #tpu.memory_space<vmem>>, vector<16x16xbf16>
    %cst_19 = arith.constant dense<0.000000e+00> : vector<16x128xf32>
    %28 = tpu.matmul %27, %13, %cst_19 {dimension_numbers = #tpu.dot_dimension_numbers<[1], [0], [0], [1], [0, 0, 1, 1], [], []>} : vector<16x16xbf16>, vector<16x128xbf16>, vector<16x128xf32> -> vector<16x128xf32>
    %29 = arith.truncf %28 : vector<16x128xf32> to vector<16x128xbf16>
    %c256 = arith.constant 256 : index
    %c0_20 = arith.constant 0 : index
    %30 = vector.load %arg5[%c256, %c0_20] : memref<384x48xbf16, #tpu.memory_space<vmem>>, vector<128x48xbf16>
    %cst_21 = arith.constant dense<0.000000e+00> : vector<16x48xf32>
    %31 = tpu.matmul %29, %30, %cst_21 {dimension_numbers = #tpu.dot_dimension_numbers<[1], [0], [0], [1], [0, 0, 1, 1], [], []>} : vector<16x128xbf16>, vector<128x48xbf16>, vector<16x48xf32> -> vector<16x48xf32>
    %32 = arith.addf %26, %31 : vector<16x48xf32>
    %cst_22 = arith.constant 0.000000e+00 : f32
    %33 = vector.broadcast %cst_22 : f32 to vector<16x48xf32>
    %34 = arith.cmpf oge, %32, %33 : vector<16x48xf32>
    %cst_23 = arith.constant 2.000000e-01 : f32
    %35 = vector.broadcast %cst_23 : f32 to vector<16x48xf32>
    %36 = arith.mulf %32, %35 : vector<16x48xf32>
    %37 = arith.select %34, %32, %36 : vector<16x48xi1>, vector<16x48xf32>
    %c0_24 = arith.constant 0 : index
    %c0_25 = arith.constant 0 : index
    %c0_26 = arith.constant 0 : index
    %38 = vector.load %arg6[%c0_24, %c0_25, %c0_26] : memref<1x16x48xf32, #tpu.memory_space<vmem>>, vector<1x16x48xf32>
    %39 = vector.shape_cast %38 : vector<1x16x48xf32> to vector<16x48xf32>
    %40 = vector.shape_cast %37 : vector<16x48xf32> to vector<1x16x48xf32>
    tpu.vector_store %arg6[%c0_24, %c0_25, %c0_26], %40 {strides = array<i32>} : memref<1x16x48xf32, #tpu.memory_space<vmem>>, vector<1x16x48xf32>,
    return
  }
  func.func @transform_0(%arg0: i32) -> (i32, i32, i32) {
    %c0_i32 = arith.constant 0 : i32
    %c0_i32_0 = arith.constant 0 : i32
    %c0_i32_1 = arith.constant 0 : i32
    return %arg0, %c0_i32, %c0_i32_0 : i32, i32, i32
  }
  func.func @transform_1(%arg0: i32) -> (i32, i32) {
    %c0_i32 = arith.constant 0 : i32
    %c0_i32_0 = arith.constant 0 : i32
    %c0_i32_1 = arith.constant 0 : i32
    return %c0_i32, %c0_i32_0 : i32, i32
  }
  func.func @transform_2(%arg0: i32) -> (i32, i32) {
    %c0_i32 = arith.constant 0 : i32
    %c0_i32_0 = arith.constant 0 : i32
    %c0_i32_1 = arith.constant 0 : i32
    return %c0_i32, %c0_i32_0 : i32, i32
  }
  func.func @transform_3(%arg0: i32) -> (i32, i32) {
    %c0_i32 = arith.constant 0 : i32
    %c0_i32_0 = arith.constant 0 : i32
    %c0_i32_1 = arith.constant 0 : i32
    return %c0_i32, %c0_i32_0 : i32, i32
  }
  func.func @transform_4(%arg0: i32) -> (i32, i32) {
    %c0_i32 = arith.constant 0 : i32
    %c0_i32_0 = arith.constant 0 : i32
    %c0_i32_1 = arith.constant 0 : i32
    return %c0_i32, %c0_i32_0 : i32, i32
  }
  func.func @transform_5(%arg0: i32) -> (i32, i32, i32) {
    %c0_i32 = arith.constant 0 : i32
    %c0_i32_0 = arith.constant 0 : i32
    %c0_i32_1 = arith.constant 0 : i32
    return %arg0, %c0_i32, %c0_i32_0 : i32, i32, i32
  }
}

</mosaic_0001>

<bundles_post_ra>
// kernel: prompt_generator_forward.4
= control target key start
LH: loop header
LB: loop body
LE: loop exit
PB: predicated region body
PF: predicated region fallthrough
CT: control target
= control target key end

     0   :  { %v418_v3 = vmov 0.0   ;;  %vm40_vm0 = vcmask 261120   ;;  %v30_v42 = vlaneseq  ;;  %vm127_vm1 = vcmask 1041408   ;;  %s585_s1 = inlined_call_operand.vmem [shape: f32[32,256], index: 1, kind: input, shape index: {}]   ;;  %s586_s3 = inlined_call_operand.vmem [shape: f32[256,16], index: 3, kind: input, shape index: {}]   ;;  %s587_s0 = inlined_call_operand.vmem [shape: f32[2,32], index: 0, kind: input, shape index: {}]   ;;  %s588_s2 = inlined_call_operand.vmem [shape: f32[1,256], index: 2, kind: input, shape index: {}]   ;;  %s589_s4 = inlined_call_operand.vmem [shape: f32[2,256], index: 4, kind: output, shape index: {0}]   ;;  %s590_s5 = inlined_call_operand.vmem [shape: f32[2,16], index: 5, kind: output, shape index: {1}]  }
   0x1   :  { %v27_v0 = vld [vmem:[%s585_s1 + $0x38] sm:$0xff]  ;;  %v26_v1 = vld [vmem:[%s585_s1 + $0x30] sm:$0xff]  ;;  %v25_v2 = vld [vmem:[%s585_s1 + $0x28] sm:$0xff]  ;;  %108 = vmatprep.mubr.f32.mxu0 %v418_v3  ;;  %vm333_vm2 = vcmask 1040384   ;;  %vm335_vm3 = vcmask 123904  }
   0x2   :  { %68 = vmatprep.subr.mxu0 %v27_v0  ;;  %v24_v4 = vld [vmem:[%s585_s1 + $0x20] sm:$0xff]  ;;  %v23_v5 = vld [vmem:[%s585_s1 + $0x18] sm:$0xff]  ;;  %v22_v6 = vld [vmem:[%s585_s1 + $0x10] sm:$0xff]  ;;  %v31_v43 = vshrl.u32 %v30_v42, 7 }
   0x3   :  { %69 = vmatpush1.msra.mxu0 %v26_v1  ;;  %v189_v7 = vld [vmem:[%s586_s3 + $0xf8] sm:$0xff]  ;;  %v188_v9 = vld [vmem:[%s586_s3 + $0xf0] sm:$0xff]  ;;  %v21_v10 = vld [vmem:[%s585_s1 + $0x8] sm:$0xff] }
   0x4   :  { %70 = vmatprep.subr.mxu0 %v25_v2  ;;  %v173_v8 = vld [vmem:[%s586_s3 + $0x78] sm:$0xff]  ;;  %347 = vmatprep.subr.mxu1 %v189_v7  ;;  %v172_v11 = vld [vmem:[%s586_s3 + $0x70] sm:$0xff]  ;;  %v20_v12 = vld [vmem:[%s585_s1] sm:$0xff]  ;;  %v32_v44 = vsub.s32 0, %v31_v43  ;;  %v36_v46 = vsub.s32 1, %v31_v43 }
   0x5   :  { %71 = vmatpush1.msra.mxu0 %v24_v4  ;;  %348 = vmatpush3.msra.mxu1 %v173_v8  ;;  %v187_v13 = vld [vmem:[%s586_s3 + $0xe8] sm:$0xff]  ;;  %v19_v14 = vld [vmem:[%s587_s0] sm:$0x3]  ;;  %v185_v18 = vld [vmem:[%s586_s3 + $0xd8] sm:$0xff] }
   0x6   :  { %72 = vmatprep.subr.mxu0 %v23_v5  ;;  %349 = vmatprep.subr.mxu1 %v188_v9  ;;  %v171_v15 = vld [vmem:[%s586_s3 + $0x68] sm:$0xff]  ;;  %v186_v16 = vld [vmem:[%s586_s3 + $0xe0] sm:$0xff]  ;;  %v169_v19 = vld [vmem:[%s586_s3 + $0x58] sm:$0xff] }
   0x7   :  { %73 = vmatpush1.msra.mxu0 %v22_v6  ;;  %350 = vmatpush3.msra.mxu1 %v172_v11  ;;  %v170_v17 = vld [vmem:[%s586_s3 + $0x60] sm:$0xff]  ;;  %v184_v20 = vld [vmem:[%s586_s3 + $0xd0] sm:$0xff]  ;;  %v183_v22 = vld [vmem:[%s586_s3 + $0xc8] sm:$0xff] }
   0x8   :  { %74 = vmatprep.subr.mxu0 %v21_v10  ;;  %351 = vmatprep.subr.mxu1 %v187_v13  ;;  %v168_v21 = vld [vmem:[%s586_s3 + $0x50] sm:$0xff]  ;;  %v167_v23 = vld [vmem:[%s586_s3 + $0x48] sm:$0xff]  ;;  %v182_v24 = vld [vmem:[%s586_s3 + $0xc0] sm:$0xff] }
   0x9   :  { %75 = vmatpush1.msra.mxu0 %v20_v12  ;;  %352 = vmatpush3.msra.mxu1 %v171_v15  ;;  %v166_v25 = vld [vmem:[%s586_s3 + $0x40] sm:$0xff]  ;;  %v181_v26 = vld [vmem:[%s586_s3 + $0xb8] sm:$0xff]  ;;  %v180_v28 = vld [vmem:[%s586_s3 + $0xb0] sm:$0xff] }
   0xa   :  { %345 = vmatmul.mubr.msk.f32.vlgmr.msra.gmra.mxu0 %vm40_vm0, %v19_v14  ;;  %382 = vmatprep.subr.mxu0 %v189_v7  ;;  %v165_v27 = vld [vmem:[%s586_s3 + $0x38] sm:$0xff]  ;;  %v164_v29 = vld [vmem:[%s586_s3 + $0x30] sm:$0xff]  ;;  %v179_v30 = vld [vmem:[%s586_s3 + $0xa8] sm:$0xff] }
   0xb   :  { %383 = vmatpush3.msra.mxu0 %v173_v8  ;;  %353 = vmatprep.subr.mxu1 %v186_v16  ;;  %v163_v31 = vld [vmem:[%s586_s3 + $0x28] sm:$0xff]  ;;  %v178_v32 = vld [vmem:[%s586_s3 + $0xa0] sm:$0xff]  ;;  %v177_v34 = vld [vmem:[%s586_s3 + $0x98] sm:$0xff] }
   0xc   :  { %384 = vmatprep.subr.mxu0 %v188_v9  ;;  %354 = vmatpush3.msra.mxu1 %v170_v17  ;;  %v162_v33 = vld [vmem:[%s586_s3 + $0x20] sm:$0xff]  ;;  %v161_v35 = vld [vmem:[%s586_s3 + $0x18] sm:$0xff]  ;;  %v176_v36 = vld [vmem:[%s586_s3 + $0x90] sm:$0xff] }
   0xd   :  { %385 = vmatpush3.msra.mxu0 %v172_v11  ;;  %355 = vmatprep.subr.mxu1 %v185_v18  ;;  %v160_v37 = vld [vmem:[%s586_s3 + $0x10] sm:$0xff]  ;;  %v175_v38 = vld [vmem:[%s586_s3 + $0x88] sm:$0xff]  ;;  %v174_v40 = vld [vmem:[%s586_s3 + $0x80] sm:$0xff] }
   0xe   :  { %386 = vmatprep.subr.mxu0 %v187_v13  ;;  %356 = vmatpush3.msra.mxu1 %v169_v19  ;;  %v159_v39 = vld [vmem:[%s586_s3 + $0x8] sm:$0xff]  ;;  %v158_v41 = vld [vmem:[%s586_s3] sm:$0xff] }
   0xf   :  { %387 = vmatpush3.msra.mxu0 %v171_v15  ;;  %357 = vmatprep.subr.mxu1 %v184_v20  ;;  %v28_v45 = vld [vmem:[%s588_s2] sm:$0x3] }
  0x10   :  { %388 = vmatprep.subr.mxu0 %v186_v16  ;;  %358 = vmatpush3.msra.mxu1 %v168_v21  ;;  %v33_v47 = vrot.slane %v28_v45, %v32_v44  ;;  %v37_v48 = vrot.slane %v28_v45, %v36_v46 }
  0x11   :  { %389 = vmatpush3.msra.mxu0 %v170_v17  ;;  %359 = vmatprep.subr.mxu1 %v183_v22 }
  0x12   :  { %390 = vmatprep.subr.mxu0 %v185_v18  ;;  %360 = vmatpush3.msra.mxu1 %v167_v23 }
  0x13   :  { %391 = vmatpush3.msra.mxu0 %v169_v19  ;;  %361 = vmatprep.subr.mxu1 %v182_v24 }
  0x14   :  { %392 = vmatprep.subr.mxu0 %v184_v20  ;;  %362 = vmatpush3.msra.mxu1 %v166_v25 }
  0x15   :  { %393 = vmatpush3.msra.mxu0 %v168_v21  ;;  %363 = vmatprep.subr.mxu1 %v181_v26 }
  0x16   :  { %394 = vmatprep.subr.mxu0 %v183_v22  ;;  %364 = vmatpush3.msra.mxu1 %v165_v27 }
  0x17   :  { %395 = vmatpush3.msra.mxu0 %v167_v23  ;;  %365 = vmatprep.subr.mxu1 %v180_v28 }
  0x18   :  { %396 = vmatprep.subr.mxu0 %v182_v24  ;;  %366 = vmatpush3.msra.mxu1 %v164_v29 }
  0x19   :  { %397 = vmatpush3.msra.mxu0 %v166_v25  ;;  %367 = vmatprep.subr.mxu1 %v179_v30 }
  0x1a   :  { %398 = vmatprep.subr.mxu0 %v181_v26  ;;  %368 = vmatpush3.msra.mxu1 %v163_v31 }
  0x1b   :  { %399 = vmatpush3.msra.mxu0 %v165_v27  ;;  %369 = vmatprep.subr.mxu1 %v178_v32 }
  0x1c   :  { %400 = vmatprep.subr.mxu0 %v180_v28  ;;  %370 = vmatpush3.msra.mxu1 %v162_v33 }
  0x1d   :  { %401 = vmatpush3.msra.mxu0 %v164_v29  ;;  %371 = vmatprep.subr.mxu1 %v177_v34 }
  0x1e   :  { %402 = vmatprep.subr.mxu0 %v179_v30  ;;  %372 = vmatpush3.msra.mxu1 %v161_v35 }
  0x1f   :  { %403 = vmatpush3.msra.mxu0 %v163_v31  ;;  %373 = vmatprep.subr.mxu1 %v176_v36 }
  0x20   :  { %404 = vmatprep.subr.mxu0 %v178_v32  ;;  %374 = vmatpush3.msra.mxu1 %v160_v37 }
  0x21   :  { %405 = vmatpush3.msra.mxu0 %v162_v33  ;;  %375 = vmatprep.subr.mxu1 %v175_v38 }
  0x22   :  { %406 = vmatprep.subr.mxu0 %v177_v34  ;;  %376 = vmatpush3.msra.mxu1 %v159_v39 }
  0x23   :  { %407 = vmatpush3.msra.mxu0 %v161_v35  ;;  %377 = vmatprep.subr.mxu1 %v174_v40 }
  0x24   :  { %408 = vmatprep.subr.mxu0 %v176_v36  ;;  %378 = vmatpush3.msra.mxu1 %v158_v41 }
  0x25   :  { %409 = vmatpush3.msra.mxu0 %v160_v37 }
  0x26   :  { %410 = vmatprep.subr.mxu0 %v175_v38 }
  0x27   :  { %411 = vmatpush3.msra.mxu0 %v159_v39 }
  0x28   :  { %412 = vmatprep.subr.mxu0 %v174_v40 }
  0x29   :  { %413 = vmatpush3.msra.mxu0 %v158_v41 }
  0xca   :  { %v110_v49 = vpop.f32.mrf.mxu0 }
  0xcb   :  { %v111_v50 = vadd.f32 %v110_v49, %v33_v47 }
  0xcc   :  { %v112_v51 = vpop.f32.mrf.mxu0 }
  0xcd   :  { %v128_v52 = vsel %vm127_vm1, %v111_v50, 0.0  ;;  %v142_v53 = vmul.f32 %v111_v50, %v111_v50  ;;  %v113_v54 = vadd.f32 %v112_v51, %v37_v48 }
  0xce   :  { %v129_v55 = vrot.slane %v128_v52, 4 }
  0xcf   :  { %v144_v56 = vsel %vm127_vm1, %v142_v53, 0.0  ;;  %v117_v57 = vcombine.low %v111_v50, %v113_v54  ;;  %v143_v58 = vmul.f32 %v113_v54, %v113_v54  ;;  %v135_v59 = vsel %vm127_vm1, %v113_v54, 0.0 }
  0xd0   :  { %v130_v60 = vadd.f32 %v129_v55, %v128_v52  ;;  %v145_v61 = vrot.slane %v144_v56, 4  ;;  %v136_v62 = vrot.slane %v135_v59, 4 }
  0xd1   :  { %346 = vst.sshfl [vmem:[%s589_s4] sm:$0x33 pattern:$0x76325410] %v117_v57  ;;  %v151_v63 = vsel %vm127_vm1, %v143_v58, 0.0 }
  0xd2   :  { %v146_v0 = vadd.f32 %v145_v61, %v144_v56  ;;  %v152_v1 = vrot.slane %v151_v63, 4  ;;  %v137_v2 = vadd.f32 %v136_v62, %v135_v59  ;;  %v131_v3 = vrot.slane %v130_v60, 2 }
  0xd4   :  { %v147_v4 = vrot.slane %v146_v0, 2  ;;  %v138_v5 = vrot.slane %v137_v2, 2  ;;  %v132_v6 = vadd.f32 %v131_v3, %v130_v60  ;;  %v153_v7 = vadd.f32 %v152_v1, %v151_v63 }
  0xd6   :  { %v139_v8 = vadd.f32 %v138_v5, %v137_v2  ;;  %v154_v9 = vrot.slane %v153_v7, 2  ;;  %v148_v10 = vadd.f32 %v147_v4, %v146_v0  ;;  %v133_v11 = vrot.slane %v132_v6, 1 }
  0xd8   :  { %v140_v12 = vrot.slane %v139_v8, 1  ;;  %v155_v13 = vadd.f32 %v154_v9, %v153_v7  ;;  %v149_v14 = vrot.slane %v148_v10, 1  ;;  %v134_v17 = vadd.f32 %v133_v11, %v132_v6 }
  0xda   :  { %v141_v15 = vadd.f32 %v140_v12, %v139_v8  ;;  %v156_v16 = vrot.slane %v155_v13, 1  ;;  %v150_v19 = vadd.f32 %v149_v14, %v148_v10 }
  0xdc   :  { %254 = vmatprep.mubr.f32.mxu1 %v141_v15  ;;  %v157_v18 = vadd.f32 %v156_v16, %v155_v13 }
  0xdd   :  { %255 = vmatmul.mubr.f32.vlgmr.msra.gmra.mxu1 %v134_v17 }
  0xde   :  { %324 = vmatprep.mubr.f32.mxu0 %v157_v18 }
  0xdf   :  { %325 = vmatmul.mubr.f32.vlgmr.msra.gmra.mxu0 %v150_v19 }
 0x19d   :  { %v379_v20 = vpop.f32.mrf.mxu1 }
 0x19f   :  { %v414_v21 = vpop.f32.mrf.mxu0  ;;  %v380_v22 = vpop.f32.mrf.mxu1 }
 0x1a0   :  { %v381_v25 = vadd.f32 %v380_v22, %v379_v20 }
 0x1a1   :  { %v415_v23 = vpop.f32.mrf.mxu0 }
 0x1a2   :  { %v416_v24 = vadd.f32 %v415_v23, %v414_v21 }
 0x1a4   :  { %v331_v26 = vrot.slane %v416_v24, 7 }
 0x1a6   :  { %v334_v27 = vsel %vm333_vm2, %v381_v25, %v331_v26 }
 0x1a7   :  { %336 = vst.msk [vmem:[%s590_s5] sm:$0x3] %vm335_vm3, %v334_v27 }

// kernel: prompt_generator_forward.5
= control target key start
LH: loop header
LB: loop body
LE: loop exit
PB: predicated region body
PF: predicated region fallthrough
CT: control target
= control target key end

     0   :  { %s1213_s24 = smov 0   ;;  %s1409_s0 = inlined_call_operand.vmem [shape: f32[2,4,64], index: 0, kind: input, shape index: {}]   ;;  %s1410_s1 = inlined_call_operand.vmem [shape: f32[1,64], index: 1, kind: input, shape index: {}]   ;;  %s1411_s2 = inlined_call_operand.vmem [shape: f32[1,64], index: 2, kind: input, shape index: {}]   ;;  %s1412_s3 = inlined_call_operand.vmem [shape: bf16[24,4], index: 3, kind: input, shape index: {}]   ;;  %s1413_s4 = inlined_call_operand.vmem [shape: bf16[192,128], index: 4, kind: input, shape index: {}]   ;;  %s1414_s5 = inlined_call_operand.vmem [shape: f32[128,16], index: 5, kind: input, shape index: {}]   ;;  %s1415_s6 = inlined_call_operand.vmem [shape: f32[2,8,128], index: 6, kind: output, shape index: {0}]   ;;  %s1416_s7 = inlined_call_operand.vmem [shape: f32[2,2,16], index: 7, kind: output, shape index: {1}]  }
   0x1 LB: > { %s932_s25 = sadd.s32 4294967295, %s1169_s24   ;;  %p936_p0 = scmp.ge.s32.totalorder %s1169_s24, 1  ;;  %s1169_s24 = sphi %s1213_s24, %s18_s24  }
   0x2   : > { %p239_p1 = scmp.lt.s32.totalorder %s1169_s24, 3 }
   0x4   : > { %p240_p2 = pnand %p936_p0, %p239_p1 }
   0x5   : > { %p273_p3 = scmp.lt.s32.totalorder (!%p240_p2), %s932_s25, 1 }
   0x6   : > { %243 = sbr.rel (%p240_p2) target bundleno = 829 (0x33d), region = 44 }
   0xb   : > { %v1171_v0 = vmov 0.0   ;;  %s1418_s25 = smov (!%p273_p3, %s932_s25), 1  ;;  %v940_v1 = vld [vmem:[%s1410_s1] ss:$0 sm:$0xff]  ;;  %vm1172_vm0 = vmmov 0   ;;  %vm309_vm1 = vcmask 1041408  }
   0xc   : > { %1017 = vmatprep.subr.bf16.mxu0 %v1171_v0  ;;  %1023 = vmatprep.subr.bf16.mxu1 %v1171_v0  ;;  %s937_s28 = sshll.u32 %s1418_s25, 2  ;;  %v941_v2 = vld [vmem:[%s1411_s2] ss:$0 sm:$0xff]  ;;  %vm305_vm2 = vcmask 31744   ;;  %v362_v9 = vld [vmem:[%s1412_s3 + $0x4] sm:$0xf] }
   0xd   : > { %1019 = vmatprep.mubr.msk.bf16.mxu0 %vm1172_vm0, %v1171_v0  ;;  %1025 = vmatprep.mubr.msk.bf16.mxu1 %vm1172_vm0, %v1171_v0  ;;  %s276_s8 = scalar_lea.vmem %s1409_s0, %s937_s28  ;;  %v304_v8 = vld [vmem:[%s1412_s3] sm:$0xf]  ;;  %v1151_v10 = vld [vmem:[%s1413_s4 + $0x38] sm:$0xff]   ;;  %v1153_v12 = vld [vmem:[%s1413_s4 + $0x30] sm:$0xff]   ;;  %vm439_vm3 = vcmask 523264   ;;  %s938_s10 = sshll.u32 %s1418_s25, 3 }
   0xe   : > { %v286_v3 = vld [vmem:[%s276_s8] sm:$0xf]  ;;  %v1152_v11 = vld [vmem:[%s1413_s4 + $0x18] sm:$0xff]   ;;  %v1154_v13 = vld [vmem:[%s1413_s4 + $0x10] sm:$0xff]   ;;  %s280_s13 = scalar_lea.vmem %s1415_s6, %s938_s10  ;;  %s939_s14 = sshll.u32 %s1418_s25, 1  ;;  %vm843_vm4 = vcmask 1040384  }
   0xf   : > { %v294_v4 = vmul.f32 %v940_v1, %v286_v3  ;;  %v1155_v14 = vld [vmem:[%s1413_s4 + $0x28] sm:$0xff]   ;;  %v1157_v16 = vld [vmem:[%s1413_s4 + $0x20] sm:$0xff]   ;;  %v1159_v22 = vld [vmem:[%s1413_s4 + $0x58] sm:$0xff]   ;;  %s284_s17 = scalar_lea.vmem %s1416_s7, %s939_s14  ;;  %vm845_vm5 = vcmask 123904  }
  0x10   : > { %v1156_v15 = vld [vmem:[%s1413_s4 + $0x8] sm:$0xff]   ;;  %v1158_v17 = vld [vmem:[%s1413_s4] sm:$0xff]   ;;  %v1160_v30 = vld [vmem:[%s1413_s4 + $0x50] sm:$0xff]  }
  0x11   : > { %v302_v5 = vadd.f32 %v941_v2, %v294_v4  ;;  %v550_v29 = vld [vmem:[%s1412_s3 + $0x8] sm:$0xf]  ;;  %v1162_v32 = vld [vmem:[%s1413_s4 + $0x40] sm:$0xff]   ;;  %v699_v33 = vld [vmem:[%s1414_s5 + $0x78] sm:$0xff] }
  0x12   : > { %v1161_v31 = vld [vmem:[%s1413_s4 + $0x48] sm:$0xff]   ;;  %v698_v34 = vld [vmem:[%s1414_s5 + $0x70] sm:$0xff]  ;;  %v696_v36 = vld [vmem:[%s1414_s5 + $0x60] sm:$0xff] }
  0x13   : > { %v303_v6 = vpack.c.bf16 %v302_v5, %v302_v5  ;;  %v697_v35 = vld [vmem:[%s1414_s5 + $0x68] sm:$0xff]  ;;  %v695_v37 = vld [vmem:[%s1414_s5 + $0x58] sm:$0xff]  ;;  %v694_v38 = vld [vmem:[%s1414_s5 + $0x50] sm:$0xff] }
  0x14   : > { %v693_v39 = vld [vmem:[%s1414_s5 + $0x48] sm:$0xff]  ;;  %v692_v40 = vld [vmem:[%s1414_s5 + $0x40] sm:$0xff]  ;;  %v691_v55 = vld [vmem:[%s1414_s5 + $0x38] sm:$0xff] }
  0x15   : > { %v311_v7 = vsel %vm309_vm1, %v303_v6, 0  ;;  %v690_v56 = vld [vmem:[%s1414_s5 + $0x30] sm:$0xff]  ;;  %v689_v57 = vld [vmem:[%s1414_s5 + $0x28] sm:$0xff]  ;;  %v688_v58 = vld [vmem:[%s1414_s5 + $0x20] sm:$0xff] }
  0x16   : > { %1018 = vmatpush3.bf16.msra.mxu0 %v311_v7  ;;  %1024 = vmatpush3.bf16.msra.mxu1 %v311_v7  ;;  %v687_v59 = vld [vmem:[%s1414_s5 + $0x18] sm:$0xff]  ;;  %v686_v60 = vld [vmem:[%s1414_s5 + $0x10] sm:$0xff]  ;;  %v685_v61 = vld [vmem:[%s1414_s5 + $0x8] sm:$0xff] }
  0x17   : > { %1029 = vmatprep.subr.bf16.mxu0 %v1171_v0  ;;  %1041 = vmatprep.subr.bf16.mxu1 %v1171_v0  ;;  %v684_v62 = vld [vmem:[%s1414_s5] sm:$0xff] }
  0x19   : > { %1020 = vmatmul.mubr.msk.bf16.vlgmr.msra.gmra.mxu0 %vm305_vm2, %v304_v8  ;;  %1026 = vmatmul.mubr.msk.bf16.vlgmr.msra.gmra.mxu1 %vm305_vm2, %v362_v9 }
  0x1a   : > { %1030 = vmatpush3.bf16.msra.mxu0 %v1151_v10  ;;  %1042 = vmatpush3.bf16.msra.mxu1 %v1152_v11 }
  0x1b   : > { %1031 = vmatprep.subr.bf16.mxu0 %v1171_v0  ;;  %1043 = vmatprep.subr.bf16.mxu1 %v1171_v0 }
  0x1c   : > { %1037 = vmatprep.mubr.msk.bf16.mxu0 %vm1172_vm0, %v1171_v0  ;;  %1049 = vmatprep.mubr.msk.bf16.mxu1 %vm1172_vm0, %v1171_v0 }
  0x1e   : > { %1032 = vmatpush3.bf16.msra.mxu0 %v1153_v12  ;;  %1044 = vmatpush3.bf16.msra.mxu1 %v1154_v13 }
  0x1f   : > { %1033 = vmatprep.subr.bf16.mxu0 %v1171_v0  ;;  %1045 = vmatprep.subr.bf16.mxu1 %v1171_v0 }
  0x22   : > { %1034 = vmatpush3.bf16.msra.mxu0 %v1155_v14  ;;  %1046 = vmatpush3.bf16.msra.mxu1 %v1156_v15 }
  0x23   : > { %1035 = vmatprep.subr.bf16.mxu0 %v1171_v0  ;;  %1047 = vmatprep.subr.bf16.mxu1 %v1171_v0 }
  0x26   : > { %1036 = vmatpush3.bf16.msra.mxu0 %v1157_v16  ;;  %1048 = vmatpush3.bf16.msra.mxu1 %v1158_v17 }
  0x27   : > { %1053 = vmatprep.subr.bf16.mxu0 %v1171_v0  ;;  %1059 = vmatprep.subr.bf16.mxu1 %v1171_v0 }
  0xd9   : > { %v347_v18 = vpop.f32.mrf.mxu0  ;;  %v400_v19 = vpop.f32.mrf.mxu1 }
  0xda   : > { %v353_v20 = vpack.c.bf16 %v347_v18, %v347_v18  ;;  %v406_v21 = vpack.c.bf16 %v400_v19, %v400_v19 }
  0xdb   : > { %v1027_v23 = vpop.f32.mrf.mxu1  ;;  %v1021_v24 = vpop.f32.mrf.mxu0 }
  0xdc   : > { %1038 = vmatmul.mubr.msk.bf16.vlgmr.msra.gmra.mxu0 %vm439_vm3, %v406_v21  ;;  %1050 = vmatmul.mubr.msk.bf16.vlgmr.msra.gmra.mxu1 %vm439_vm3, %v353_v20 }
  0xdd   : > { %1054 = vmatpush3.bf16.msra.mxu0 %v311_v7  ;;  %v403_v25 = vpop.f32.mrf.mxu1  ;;  %1055 = vmatprep.mubr.msk.bf16.mxu0 %vm1172_vm0, %v1171_v0  ;;  %v350_v26 = vpop.f32.mrf.mxu0 }
  0xde   : > { %1060 = vmatpush3.bf16.msra.mxu1 %v1159_v22  ;;  %1067 = vmatprep.mubr.msk.bf16.mxu1 %vm1172_vm0, %v1171_v0 }
  0xdf   : > { %v1028_v27 = vpop.f32.mrf.mxu1  ;;  %v1022_v28 = vpop.f32.mrf.mxu0  ;;  %1061 = vmatprep.subr.bf16.mxu1 %v1171_v0  ;;  %1071 = vmatprep.subr.mxu0 %v1171_v0 }
  0xe2   : > { %1062 = vmatpush3.bf16.msra.mxu1 %v1160_v30 }
  0xe3   : > { %1063 = vmatprep.subr.bf16.mxu1 %v1171_v0 }
  0xe4   : > { %1056 = vmatmul.mubr.msk.bf16.vlgmr.msra.gmra.mxu0 %vm305_vm2, %v550_v29 }
  0xe5   : > { %1103 = vmatprep.mubr.msk.f32.mxu0 %vm1172_vm0, %v1171_v0  ;;  %1072 = vmatpush3.msra.mxu0 %v699_v33 }
  0xe6   : > { %1064 = vmatpush3.bf16.msra.mxu1 %v1161_v31  ;;  %1073 = vmatprep.subr.mxu0 %v1171_v0 }
  0xe7   : > { %1065 = vmatprep.subr.bf16.mxu1 %v1171_v0  ;;  %1074 = vmatpush3.msra.mxu0 %v698_v34 }
  0xe8   : > { %1075 = vmatprep.subr.mxu0 %v1171_v0 }
  0xe9   : > { %1076 = vmatpush3.msra.mxu0 %v697_v35 }
  0xea   : > { %1066 = vmatpush3.bf16.msra.mxu1 %v1162_v32  ;;  %1077 = vmatprep.subr.mxu0 %v1171_v0 }
  0xeb   : > { %1106 = vmatprep.subr.mxu1 %v1171_v0  ;;  %1078 = vmatpush3.msra.mxu0 %v696_v36 }
  0xec   : > { %1079 = vmatprep.subr.mxu0 %v1171_v0 }
  0xed   : > { %1080 = vmatpush3.msra.mxu0 %v695_v37 }
  0xee   : > { %1081 = vmatprep.subr.mxu0 %v1171_v0 }
  0xef   : > { %1082 = vmatpush3.msra.mxu0 %v694_v38 }
  0xf0   : > { %1083 = vmatprep.subr.mxu0 %v1171_v0 }
  0xf1   : > { %1084 = vmatpush3.msra.mxu0 %v693_v39 }
  0xf2   : > { %1085 = vmatprep.subr.mxu0 %v1171_v0 }
  0xf3   : > { %1086 = vmatpush3.msra.mxu0 %v692_v40 }
  0xf4   : > { %1087 = vmatprep.subr.mxu0 %v1171_v0 }
  0xf5   : > { %1088 = vmatpush3.msra.mxu0 %v691_v55 }
  0xf6   : > { %1089 = vmatprep.subr.mxu0 %v1171_v0 }
  0xf7   : > { %1090 = vmatpush3.msra.mxu0 %v690_v56 }
  0xf8   : > { %1091 = vmatprep.subr.mxu0 %v1171_v0 }
  0xf9   : > { %1092 = vmatpush3.msra.mxu0 %v689_v57 }
  0xfa   : > { %1093 = vmatprep.subr.mxu0 %v1171_v0 }
  0xfb   : > { %1094 = vmatpush3.msra.mxu0 %v688_v58 }
  0xfc   : > { %1095 = vmatprep.subr.mxu0 %v1171_v0 }
  0xfd   : > { %1096 = vmatpush3.msra.mxu0 %v687_v59 }
  0xfe   : > { %1097 = vmatprep.subr.mxu0 %v1171_v0 }
  0xff   : > { %1098 = vmatpush3.msra.mxu0 %v686_v60 }
 0x100   : > { %1099 = vmatprep.subr.mxu0 %v1171_v0 }
 0x101   : > { %1100 = vmatpush3.msra.mxu0 %v685_v61 }
 0x102   : > { %1101 = vmatprep.subr.mxu0 %v1171_v0 }
 0x103   : > { %1102 = vmatpush3.msra.mxu0 %v684_v62 }
 0x19c   : > { %v477_v41 = vpop.f32.mrf.mxu0  ;;  %v544_v42 = vpop.f32.mrf.mxu1 }
 0x19d   : > { %v1346_v43 = vadd.f32 %v544_v42, %v477_v41 }
 0x19e   : > { %v1039_v44 = vpop.f32.mrf.mxu0  ;;  %v1051_v45 = vpop.f32.mrf.mxu1 }
 0x1a0   : > { %v480_v46 = vpop.f32.mrf.mxu0  ;;  %v547_v47 = vpop.f32.mrf.mxu1 }
 0x1a2   : > { %v1040_v48 = vpop.f32.mrf.mxu0  ;;  %v1052_v49 = vpop.f32.mrf.mxu1 }
 0x1a4   : > { %v588_v50 = vpop.f32.mrf.mxu0 }
 0x1a5   : > { %v594_v51 = vpack.c.bf16 %v588_v50, %v588_v50 }
 0x1a6   : > { %v1057_v52 = vpop.f32.mrf.mxu0 }
 0x1a7   : > { %1068 = vmatmul.mubr.msk.bf16.vlgmr.msra.gmra.mxu1 %vm439_vm3, %v594_v51 }
 0x1a8   : > { %v591_v53 = vpop.f32.mrf.mxu0  ;;  %1107 = vmatpush3.msra.mxu1 %v699_v33  ;;  %1138 = vmatprep.mubr.msk.f32.mxu1 %vm1172_vm0, %v1171_v0 }
 0x1a9   : > { %1108 = vmatprep.subr.mxu1 %v1171_v0 }
 0x1aa   : > { %v1058_v54 = vpop.f32.mrf.mxu0  ;;  %1109 = vmatpush3.msra.mxu1 %v698_v34 }
 0x1ab   : > { %1110 = vmatprep.subr.mxu1 %v1171_v0 }
 0x1ac   : > { %1111 = vmatpush3.msra.mxu1 %v697_v35 }
 0x1ad   : > { %1112 = vmatprep.subr.mxu1 %v1171_v0 }
 0x1ae   : > { %1113 = vmatpush3.msra.mxu1 %v696_v36 }
 0x1af   : > { %1114 = vmatprep.subr.mxu1 %v1171_v0 }
 0x1b0   : > { %1115 = vmatpush3.msra.mxu1 %v695_v37 }
 0x1b1   : > { %1116 = vmatprep.subr.mxu1 %v1171_v0 }
 0x1b2   : > { %1117 = vmatpush3.msra.mxu1 %v694_v38 }
 0x1b3   : > { %1118 = vmatprep.subr.mxu1 %v1171_v0 }
 0x1b4   : > { %1119 = vmatpush3.msra.mxu1 %v693_v39 }
 0x1b5   : > { %1120 = vmatprep.subr.mxu1 %v1171_v0 }
 0x1b6   : > { %1121 = vmatpush3.msra.mxu1 %v692_v40 }
 0x1b7   : > { %1122 = vmatprep.subr.mxu1 %v1171_v0 }
 0x1b8   : > { %1123 = vmatpush3.msra.mxu1 %v691_v55 }
 0x1b9   : > { %1124 = vmatprep.subr.mxu1 %v1171_v0 }
 0x1ba   : > { %1125 = vmatpush3.msra.mxu1 %v690_v56 }
 0x1bb   : > { %1126 = vmatprep.subr.mxu1 %v1171_v0 }
 0x1bc   : > { %1127 = vmatpush3.msra.mxu1 %v689_v57 }
 0x1bd   : > { %1128 = vmatprep.subr.mxu1 %v1171_v0 }
 0x1be   : > { %1129 = vmatpush3.msra.mxu1 %v688_v58 }
 0x1bf   : > { %1130 = vmatprep.subr.mxu1 %v1171_v0 }
 0x1c0   : > { %1131 = vmatpush3.msra.mxu1 %v687_v59 }
 0x1c1   : > { %1132 = vmatprep.subr.mxu1 %v1171_v0 }
 0x1c2   : > { %1133 = vmatpush3.msra.mxu1 %v686_v60 }
 0x1c3   : > { %1134 = vmatprep.subr.mxu1 %v1171_v0 }
 0x1c4   : > { %1135 = vmatpush3.msra.mxu1 %v685_v61 }
 0x1c5   : > { %1136 = vmatprep.subr.mxu1 %v1171_v0 }
 0x1c6   : > { %1137 = vmatpush3.msra.mxu1 %v684_v62 }
 0x267   : > { %v664_v63 = vpop.f32.mrf.mxu1 }
 0x268   : > { %v670_v1 = vadd.f32 %v664_v63, %v1346_v43 }
 0x269   : > { %v1069_v2 = vpop.f32.mrf.mxu1 }
 0x26a   : > { %v671_v3 = vrot.slane %v670_v1, 4  ;;  %v677_v4 = vmul.f32 %v670_v1, %v670_v1  ;;  %847 = vst [vmem:[%s280_s13] sm:$0xff] %v670_v1 }
 0x26b   : > { %v667_v5 = vpop.f32.mrf.mxu1 }
 0x26c   : > { %v672_v6 = vadd.f32 %v671_v3, %v670_v1  ;;  %v678_v7 = vrot.slane %v677_v4, 4 }
 0x26d   : > { %v1070_v8 = vpop.f32.mrf.mxu1 }
 0x26e   : > { %v673_v0 = vrot.slane %v672_v6, 2  ;;  %v679_v9 = vadd.f32 %v678_v7, %v677_v4 }
 0x270   : > { %v674_v10 = vadd.f32 %v673_v0, %v672_v6  ;;  %v680_v11 = vrot.slane %v679_v9, 2 }
 0x272   : > { %v675_v12 = vrot.slane %v674_v10, 1  ;;  %v681_v13 = vadd.f32 %v680_v11, %v679_v9 }
 0x274   : > { %v676_v14 = vadd.f32 %v675_v12, %v674_v10  ;;  %v682_v15 = vrot.slane %v681_v13, 1 }
 0x276   : > { %1104 = vmatmul.mubr.f32.vlgmr.msra.gmra.mxu0 %v676_v14  ;;  %v683_v16 = vadd.f32 %v682_v15, %v681_v13 }
 0x278   : > { %1139 = vmatmul.mubr.f32.vlgmr.msra.gmra.mxu1 %v683_v16 }
 0x336   : > { %v766_v17 = vpop.f32.mrf.mxu0 }
 0x338   : > { %v1105_v18 = vpop.f32.mrf.mxu0  ;;  %v836_v19 = vpop.f32.mrf.mxu1 }
 0x339   : > { %v841_v20 = vrot.slane %v836_v19, 7 }
 0x33a   : > { %v1140_v21 = vpop.f32.mrf.mxu1 }
 0x33b   : > { %v844_v22 = vsel %vm843_vm4, %v766_v17, %v841_v20 }
 0x33c   : > { %846 = vst.msk [vmem:[%s284_s17] sm:$0x3] %vm845_vm5, %v844_v22 }
 0x33d PF: > { %s18_s24 = sadd.s32 1, %s1169_s24  }
 0x33e   : > { %p15_p4 = scmp.ge.s32.totalorder %s18_s24, 4  }
 0x340   :  { %17 = sbr.rel (!%p15_p4) target bundleno = 1 (0x1), region = 86 }

// kernel: prompt_generator_forward.6
= control target key start
LH: loop header
LB: loop body
LE: loop exit
PB: predicated region body
PF: predicated region fallthrough
CT: control target
= control target key end

     0   :  { %s1400_s24 = smov 0   ;;  %s1649_s0 = inlined_call_operand.vmem [shape: f32[2,8,128], index: 0, kind: input, shape index: {}]   ;;  %s1650_s1 = inlined_call_operand.vmem [shape: f32[1,128], index: 1, kind: input, shape index: {}]   ;;  %s1651_s2 = inlined_call_operand.vmem [shape: f32[1,128], index: 2, kind: input, shape index: {}]   ;;  %s1652_s3 = inlined_call_operand.vmem [shape: bf16[48,8], index: 3, kind: input, shape index: {}]   ;;  %s1653_s4 = inlined_call_operand.vmem [shape: bf16[384,128], index: 4, kind: input, shape index: {}]   ;;  %s1654_s5 = inlined_call_operand.vmem [shape: f32[128,8], index: 5, kind: input, shape index: {}]   ;;  %s1655_s6 = inlined_call_operand.vmem [shape: f32[2,16,128], index: 6, kind: output, shape index: {0}]   ;;  %s1656_s7 = inlined_call_operand.vmem [shape: f32[2,2,8], index: 7, kind: output, shape index: {1}]  }
   0x1 LB: > { %s1054_s25 = sadd.s32 4294967295, %s1356_s24   ;;  %p1058_p0 = scmp.ge.s32.totalorder %s1356_s24, 1  ;;  %s1356_s24 = sphi %s1400_s24, %s18_s24  }
   0x2   : > { %p239_p1 = scmp.lt.s32.totalorder %s1356_s24, 3 }
   0x4   : > { %p240_p2 = pnand %p1058_p0, %p239_p1 }
   0x5   : > { %p274_p3 = scmp.lt.s32.totalorder (!%p240_p2), %s1054_s25, 1 }
   0x6   : > { %243 = sbr.rel (%p240_p2) target bundleno = 854 (0x356), region = 44 }
   0xb   : > { %v1358_v0 = vmov 0.0   ;;  %s1658_s25 = smov (!%p274_p3, %s1054_s25), 1  ;;  %v1063_v1 = vld [vmem:[%s1650_s1] ss:$0 sm:$0xff]  ;;  %vm1359_vm0 = vmmov 0   ;;  %v1325_v2 = vld [vmem:[%s1653_s4 + $0x38] sm:$0xff]  }
   0xc   : > { %1165 = vmatprep.subr.bf16.mxu0 %v1358_v0  ;;  %1197 = vmatprep.subr.bf16.mxu1 %v1358_v0  ;;  %s1059_s28 = sshll.u32 %s1658_s25, 3  ;;  %v1064_v3 = vld [vmem:[%s1651_s2] ss:$0 sm:$0xff]  ;;  %v1326_v5 = vld [vmem:[%s1653_s4 + $0x30] sm:$0xff]   ;;  %v1328_v8 = vld [vmem:[%s1653_s4 + $0x28] sm:$0xff]   ;;  %vm320_vm2 = vcmask 1043456  }
   0xd   : > { %1167 = vmatprep.mubr.msk.bf16.mxu0 %vm1359_vm0, %v1358_v0  ;;  %1213 = vmatprep.mubr.msk.bf16.mxu1 %vm1359_vm0, %v1358_v0  ;;  %s277_s10 = scalar_lea.vmem %s1649_s0, %s1059_s28  ;;  %vm316_vm3 = vcmask 64512   ;;  %v1330_v11 = vld [vmem:[%s1653_s4 + $0x20] sm:$0xff]   ;;  %v1332_v15 = vld [vmem:[%s1653_s4 + $0x18] sm:$0xff]   ;;  %v1334_v16 = vld [vmem:[%s1653_s4 + $0x10] sm:$0xff]   ;;  %s1097_s13 = sshll.u32 %s1658_s25, 4  ;;  %vm962_vm4 = vcmask 1040384  }
   0xe   : > { %v288_v4 = vld [vmem:[%s277_s10] sm:$0xff]  ;;  %1198 = vmatpush3.bf16.msra.mxu1 %v1325_v2  ;;  %v1324_v17 = vld [vmem:[%s1652_s3 + $0x8] sm:$0xff]   ;;  %v1327_v18 = vld [vmem:[%s1653_s4 + $0x78] sm:$0xff]   ;;  %s282_s16 = scalar_lea.vmem %s1655_s6, %s1097_s13  ;;  %s1062_s17 = sshll.u32 %s1658_s25, 1  ;;  %vm964_vm5 = vcmask 58368  }
   0xf   : > { %v296_v6 = vmul.f32 %v1063_v1, %v288_v4  ;;  %1199 = vmatprep.subr.bf16.mxu1 %v1358_v0  ;;  %v1323_v13 = vld [vmem:[%s1652_s3] sm:$0xff]   ;;  %v1329_v19 = vld [vmem:[%s1653_s4 + $0x70] sm:$0xff]   ;;  %v1331_v20 = vld [vmem:[%s1653_s4 + $0x68] sm:$0xff]   ;;  %s286_s20 = scalar_lea.vmem %s1656_s7, %s1062_s17 }
  0x10   : > { %v1333_v21 = vld [vmem:[%s1653_s4 + $0x60] sm:$0xff]   ;;  %v1335_v22 = vld [vmem:[%s1653_s4 + $0x58] sm:$0xff]   ;;  %v1336_v23 = vld [vmem:[%s1653_s4 + $0x8] sm:$0xff]  }
  0x11   : > { %v304_v7 = vadd.f32 %v1064_v3, %v296_v6  ;;  %v1337_v24 = vld [vmem:[%s1653_s4 + $0x50] sm:$0xff]   ;;  %v1338_v25 = vld [vmem:[%s1653_s4] sm:$0xff]   ;;  %v1339_v26 = vld [vmem:[%s1653_s4 + $0x48] sm:$0xff]  }
  0x12   : > { %1200 = vmatpush3.bf16.msra.mxu1 %v1326_v5  ;;  %v1340_v27 = vld [vmem:[%s1653_s4 + $0x40] sm:$0xff]   ;;  %v1342_v31 = vld [vmem:[%s1653_s4 + $0xb8] sm:$0xff]   ;;  %v1343_v35 = vld [vmem:[%s1653_s4 + $0xb0] sm:$0xff]  }
  0x13   : > { %vm305_vm1 = vcmp.ge.f32.partialorder %v304_v7, 0.0  ;;  %v306_v9 = vmul.f32 0.2, %v304_v7  ;;  %1201 = vmatprep.subr.bf16.mxu1 %v1358_v0  ;;  %v1341_v40 = vld [vmem:[%s1652_s3 + $0x10] sm:$0xff]   ;;  %v1344_v41 = vld [vmem:[%s1653_s4 + $0xa8] sm:$0xff]   ;;  %v1345_v42 = vld [vmem:[%s1653_s4 + $0xa0] sm:$0xff]  }
  0x14   : > { %v1346_v43 = vld [vmem:[%s1653_s4 + $0x98] sm:$0xff]   ;;  %v1347_v44 = vld [vmem:[%s1653_s4 + $0x90] sm:$0xff]   ;;  %v1348_v45 = vld [vmem:[%s1653_s4 + $0x88] sm:$0xff]  }
  0x15   : > { %v307_v10 = vsel %vm305_vm1, %v304_v7, %v306_v9  ;;  %v1349_v46 = vld [vmem:[%s1653_s4 + $0x80] sm:$0xff]   ;;  %v818_v47 = vld [vmem:[%s1654_s5 + $0x78] sm:$0xff]  ;;  %v817_v48 = vld [vmem:[%s1654_s5 + $0x70] sm:$0xff] }
  0x16   : > { %v308_v12 = vpack.c.bf16 %v307_v10, %v307_v10  ;;  %1202 = vmatpush3.bf16.msra.mxu1 %v1328_v8  ;;  %v816_v49 = vld [vmem:[%s1654_s5 + $0x68] sm:$0xff]  ;;  %v815_v50 = vld [vmem:[%s1654_s5 + $0x60] sm:$0xff]  ;;  %v814_v51 = vld [vmem:[%s1654_s5 + $0x58] sm:$0xff] }
  0x17   : > { %1203 = vmatprep.subr.bf16.mxu1 %v1358_v0  ;;  %v813_v4 = vld [vmem:[%s1654_s5 + $0x50] sm:$0xff]  ;;  %v812_v5 = vld [vmem:[%s1654_s5 + $0x48] sm:$0xff]  ;;  %v811_v6 = vld [vmem:[%s1654_s5 + $0x40] sm:$0xff] }
  0x18   : > { %v1444_v14 = vsel %vm320_vm2, %v308_v12, 0  ;;  %v810_v7 = vld [vmem:[%s1654_s5 + $0x38] sm:$0xff]  ;;  %v809_v8 = vld [vmem:[%s1654_s5 + $0x30] sm:$0xff]  ;;  %v808_v9 = vld [vmem:[%s1654_s5 + $0x28] sm:$0xff] }
  0x19   : > { %1166 = vmatpush3.bf16.msra.mxu0 %v1444_v14  ;;  %v807_v10 = vld [vmem:[%s1654_s5 + $0x20] sm:$0xff]  ;;  %v805_v12 = vld [vmem:[%s1654_s5 + $0x10] sm:$0xff] }
  0x1a   : > { %1171 = vmatprep.subr.bf16.mxu0 %v1358_v0  ;;  %1204 = vmatpush3.bf16.msra.mxu1 %v1330_v11  ;;  %v806_v11 = vld [vmem:[%s1654_s5 + $0x18] sm:$0xff] }
  0x1b   : > { %1205 = vmatprep.subr.bf16.mxu1 %v1358_v0 }
  0x1c   : > { %1168 = vmatmul.mubr.msk.bf16.vlgmr.msra.gmra.mxu0 %vm316_vm3, %v1323_v13  ;;  %v804_v13 = vld [vmem:[%s1654_s5 + $0x8] sm:$0xff] }
  0x1d   : > { %1172 = vmatpush3.bf16.msra.mxu0 %v1444_v14  ;;  %1173 = vmatprep.mubr.msk.bf16.mxu0 %vm1359_vm0, %v1358_v0 }
  0x1e   : > { %1177 = vmatprep.subr.bf16.mxu0 %v1358_v0  ;;  %1206 = vmatpush3.bf16.msra.mxu1 %v1332_v15 }
  0x1f   : > { %1207 = vmatprep.subr.bf16.mxu1 %v1358_v0 }
  0x22   : > { %1208 = vmatpush3.bf16.msra.mxu1 %v1334_v16 }
  0x23   : > { %1209 = vmatprep.subr.bf16.mxu1 %v1358_v0 }
  0x24   : > { %1174 = vmatmul.mubr.msk.bf16.vlgmr.msra.gmra.mxu0 %vm316_vm3, %v1324_v17 }
  0x25   : > { %1178 = vmatpush3.bf16.msra.mxu0 %v1327_v18  ;;  %1193 = vmatprep.mubr.msk.bf16.mxu0 %vm1359_vm0, %v1358_v0 }
  0x26   : > { %1179 = vmatprep.subr.bf16.mxu0 %v1358_v0  ;;  %1210 = vmatpush3.bf16.msra.mxu1 %v1336_v23 }
  0x27   : > { %1211 = vmatprep.subr.bf16.mxu1 %v1358_v0 }
  0x29   : > { %1180 = vmatpush3.bf16.msra.mxu0 %v1329_v19 }
  0x2a   : > { %1181 = vmatprep.subr.bf16.mxu0 %v1358_v0  ;;  %1212 = vmatpush3.bf16.msra.mxu1 %v1338_v25 }
  0x2b   : > { %1223 = vmatprep.subr.bf16.mxu1 %v1358_v0 }
  0x2d   : > { %1182 = vmatpush3.bf16.msra.mxu0 %v1331_v20 }
  0x2e   : > { %1183 = vmatprep.subr.bf16.mxu0 %v1358_v0 }
  0x31   : > { %1184 = vmatpush3.bf16.msra.mxu0 %v1333_v21 }
  0x32   : > { %1185 = vmatprep.subr.bf16.mxu0 %v1358_v0 }
  0x35   : > { %1186 = vmatpush3.bf16.msra.mxu0 %v1335_v22 }
  0x36   : > { %1187 = vmatprep.subr.bf16.mxu0 %v1358_v0 }
  0x39   : > { %1188 = vmatpush3.bf16.msra.mxu0 %v1337_v24 }
  0x3a   : > { %1189 = vmatprep.subr.bf16.mxu0 %v1358_v0 }
  0x3d   : > { %1190 = vmatpush3.bf16.msra.mxu0 %v1339_v26 }
  0x3e   : > { %1191 = vmatprep.subr.bf16.mxu0 %v1358_v0 }
  0x41   : > { %1192 = vmatpush3.bf16.msra.mxu0 %v1340_v27 }
  0x42   : > { %1217 = vmatprep.subr.bf16.mxu0 %v1358_v0 }
  0xdc   : > { %v358_v28 = vpop.f32.mrf.mxu0 }
  0xde   : > { %v1169_v29 = vpop.f32.mrf.mxu0 }
  0xe0   : > { %v361_v30 = vpop.f32.mrf.mxu0 }
  0xe1   : > { %v365_v32 = vpack.c.bf16 %v361_v30, %v358_v28 }
  0xe2   : > { %v1170_v33 = vpop.f32.mrf.mxu0 }
  0xe3   : > { %1214 = vmatmul.mubr.bf16.vlgmr.msra.gmra.mxu1 %v365_v32 }
  0xe4   : > { %v426_v34 = vpop.f32.mrf.mxu0  ;;  %1224 = vmatpush3.bf16.msra.mxu1 %v1342_v31  ;;  %1239 = vmatprep.mubr.msk.bf16.mxu1 %vm1359_vm0, %v1358_v0 }
  0xe5   : > { %1225 = vmatprep.subr.bf16.mxu1 %v1358_v0 }
  0xe6   : > { %v1175_v36 = vpop.f32.mrf.mxu0 }
  0xe8   : > { %v429_v37 = vpop.f32.mrf.mxu0  ;;  %1226 = vmatpush3.bf16.msra.mxu1 %v1343_v35 }
  0xe9   : > { %v433_v38 = vpack.c.bf16 %v429_v37, %v426_v34  ;;  %1227 = vmatprep.subr.bf16.mxu1 %v1358_v0 }
  0xea   : > { %v1176_v39 = vpop.f32.mrf.mxu0 }
  0xeb   : > { %1194 = vmatmul.mubr.bf16.vlgmr.msra.gmra.mxu0 %v433_v38 }
  0xec   : > { %1218 = vmatpush3.bf16.msra.mxu0 %v1444_v14  ;;  %1219 = vmatprep.mubr.msk.bf16.mxu0 %vm1359_vm0, %v1358_v0  ;;  %v803_v14 = vld [vmem:[%s1654_s5] sm:$0xff] }
  0xed   : > { %1243 = vmatprep.subr.mxu0 %v1358_v0  ;;  %1228 = vmatpush3.bf16.msra.mxu1 %v1344_v41 }
  0xee   : > { %1229 = vmatprep.subr.bf16.mxu1 %v1358_v0 }
  0xf1   : > { %1230 = vmatpush3.bf16.msra.mxu1 %v1345_v42 }
  0xf2   : > { %1231 = vmatprep.subr.bf16.mxu1 %v1358_v0 }
  0xf3   : > { %1220 = vmatmul.mubr.msk.bf16.vlgmr.msra.gmra.mxu0 %vm316_vm3, %v1341_v40 }
  0xf4   : > { %1275 = vmatprep.mubr.msk.f32.mxu0 %vm1359_vm0, %v1358_v0  ;;  %1244 = vmatpush3.msra.mxu0 %v818_v47 }
  0xf5   : > { %1232 = vmatpush3.bf16.msra.mxu1 %v1346_v43  ;;  %1245 = vmatprep.subr.mxu0 %v1358_v0 }
  0xf6   : > { %1233 = vmatprep.subr.bf16.mxu1 %v1358_v0  ;;  %1246 = vmatpush3.msra.mxu0 %v817_v48 }
  0xf7   : > { %1247 = vmatprep.subr.mxu0 %v1358_v0 }
  0xf8   : > { %1248 = vmatpush3.msra.mxu0 %v816_v49 }
  0xf9   : > { %1234 = vmatpush3.bf16.msra.mxu1 %v1347_v44  ;;  %1249 = vmatprep.subr.mxu0 %v1358_v0 }
  0xfa   : > { %1235 = vmatprep.subr.bf16.mxu1 %v1358_v0  ;;  %1250 = vmatpush3.msra.mxu0 %v815_v50 }
  0xfb   : > { %1251 = vmatprep.subr.mxu0 %v1358_v0 }
  0xfc   : > { %1252 = vmatpush3.msra.mxu0 %v814_v51 }
  0xfd   : > { %1236 = vmatpush3.bf16.msra.mxu1 %v1348_v45  ;;  %1253 = vmatprep.subr.mxu0 %v1358_v0 }
  0xfe   : > { %1237 = vmatprep.subr.bf16.mxu1 %v1358_v0  ;;  %1254 = vmatpush3.msra.mxu0 %v813_v4 }
  0xff   : > { %1255 = vmatprep.subr.mxu0 %v1358_v0 }
 0x100   : > { %1256 = vmatpush3.msra.mxu0 %v812_v5 }
 0x101   : > { %1238 = vmatpush3.bf16.msra.mxu1 %v1349_v46  ;;  %1257 = vmatprep.subr.mxu0 %v1358_v0 }
 0x102   : > { %1278 = vmatprep.subr.mxu1 %v1358_v0  ;;  %1258 = vmatpush3.msra.mxu0 %v811_v6 }
 0x103   : > { %1259 = vmatprep.subr.mxu0 %v1358_v0 }
 0x104   : > { %1260 = vmatpush3.msra.mxu0 %v810_v7 }
 0x105   : > { %1261 = vmatprep.subr.mxu0 %v1358_v0 }
 0x106   : > { %1262 = vmatpush3.msra.mxu0 %v809_v8 }
 0x107   : > { %1263 = vmatprep.subr.mxu0 %v1358_v0 }
 0x108   : > { %1264 = vmatpush3.msra.mxu0 %v808_v9 }
 0x109   : > { %1265 = vmatprep.subr.mxu0 %v1358_v0 }
 0x10a   : > { %1266 = vmatpush3.msra.mxu0 %v807_v10 }
 0x10b   : > { %1267 = vmatprep.subr.mxu0 %v1358_v0 }
 0x10c   : > { %1268 = vmatpush3.msra.mxu0 %v806_v11 }
 0x10d   : > { %1269 = vmatprep.subr.mxu0 %v1358_v0 }
 0x10e   : > { %1270 = vmatpush3.msra.mxu0 %v805_v12 }
 0x10f   : > { %1271 = vmatprep.subr.mxu0 %v1358_v0 }
 0x110   : > { %1272 = vmatpush3.msra.mxu0 %v804_v13 }
 0x111   : > { %1273 = vmatprep.subr.mxu0 %v1358_v0 }
 0x112   : > { %1274 = vmatpush3.msra.mxu0 %v803_v14 }
 0x1a3   : > { %v621_v52 = vpop.f32.mrf.mxu1 }
 0x1a5   : > { %v1215_v53 = vpop.f32.mrf.mxu1 }
 0x1a7   : > { %v624_v54 = vpop.f32.mrf.mxu1 }
 0x1a9   : > { %v1216_v55 = vpop.f32.mrf.mxu1 }
 0x1ab   : > { %v532_v56 = vpop.f32.mrf.mxu0 }
 0x1ac   : > { %v1572_v57 = vadd.f32 %v621_v52, %v532_v56 }
 0x1ad   : > { %v1195_v58 = vpop.f32.mrf.mxu0 }
 0x1af   : > { %v535_v59 = vpop.f32.mrf.mxu0 }
 0x1b0   : > { %v1574_v60 = vadd.f32 %v624_v54, %v535_v59 }
 0x1b1   : > { %v1196_v61 = vpop.f32.mrf.mxu0 }
 0x1b3   : > { %v672_v62 = vpop.f32.mrf.mxu0 }
 0x1b5   : > { %v1221_v63 = vpop.f32.mrf.mxu0 }
 0x1b7   : > { %v675_v1 = vpop.f32.mrf.mxu0 }
 0x1b8   : > { %v679_v2 = vpack.c.bf16 %v675_v1, %v672_v62 }
 0x1b9   : > { %v1222_v3 = vpop.f32.mrf.mxu0 }
 0x1ba   : > { %1240 = vmatmul.mubr.bf16.vlgmr.msra.gmra.mxu1 %v679_v2 }
 0x1bb   : > { %1279 = vmatpush3.msra.mxu1 %v818_v47  ;;  %1310 = vmatprep.mubr.msk.f32.mxu1 %vm1359_vm0, %v1358_v0 }
 0x1bc   : > { %1280 = vmatprep.subr.mxu1 %v1358_v0 }
 0x1bd   : > { %1281 = vmatpush3.msra.mxu1 %v817_v48 }
 0x1be   : > { %1282 = vmatprep.subr.mxu1 %v1358_v0 }
 0x1bf   : > { %1283 = vmatpush3.msra.mxu1 %v816_v49 }
 0x1c0   : > { %1284 = vmatprep.subr.mxu1 %v1358_v0 }
 0x1c1   : > { %1285 = vmatpush3.msra.mxu1 %v815_v50 }
 0x1c2   : > { %1286 = vmatprep.subr.mxu1 %v1358_v0 }
 0x1c3   : > { %1287 = vmatpush3.msra.mxu1 %v814_v51 }
 0x1c4   : > { %1288 = vmatprep.subr.mxu1 %v1358_v0 }
 0x1c5   : > { %1289 = vmatpush3.msra.mxu1 %v813_v4 }
 0x1c6   : > { %1290 = vmatprep.subr.mxu1 %v1358_v0 }
 0x1c7   : > { %1291 = vmatpush3.msra.mxu1 %v812_v5 }
 0x1c8   : > { %1292 = vmatprep.subr.mxu1 %v1358_v0 }
 0x1c9   : > { %1293 = vmatpush3.msra.mxu1 %v811_v6 }
 0x1ca   : > { %1294 = vmatprep.subr.mxu1 %v1358_v0 }
 0x1cb   : > { %1295 = vmatpush3.msra.mxu1 %v810_v7 }
 0x1cc   : > { %1296 = vmatprep.subr.mxu1 %v1358_v0 }
 0x1cd   : > { %1297 = vmatpush3.msra.mxu1 %v809_v8 }
 0x1ce   : > { %1298 = vmatprep.subr.mxu1 %v1358_v0 }
 0x1cf   : > { %1299 = vmatpush3.msra.mxu1 %v808_v9 }
 0x1d0   : > { %1300 = vmatprep.subr.mxu1 %v1358_v0 }
 0x1d1   : > { %1301 = vmatpush3.msra.mxu1 %v807_v10 }
 0x1d2   : > { %1302 = vmatprep.subr.mxu1 %v1358_v0 }
 0x1d3   : > { %1303 = vmatpush3.msra.mxu1 %v806_v11 }
 0x1d4   : > { %1304 = vmatprep.subr.mxu1 %v1358_v0 }
 0x1d5   : > { %1305 = vmatpush3.msra.mxu1 %v805_v12 }
 0x1d6   : > { %1306 = vmatprep.subr.mxu1 %v1358_v0 }
 0x1d7   : > { %1307 = vmatpush3.msra.mxu1 %v804_v13 }
 0x1d8   : > { %1308 = vmatprep.subr.mxu1 %v1358_v0 }
 0x1d9   : > { %1309 = vmatpush3.msra.mxu1 %v803_v14 }
 0x27a   : > { %v778_v15 = vpop.f32.mrf.mxu1 }
 0x27b   : > { %v785_v16 = vadd.f32 %v778_v15, %v1572_v57 }
 0x27c   : > { %v1241_v17 = vpop.f32.mrf.mxu1 }
 0x27d   : > { %966 = vst [vmem:[%s282_s16] sm:$0xff] %v785_v16  ;;  %v794_v21 = vmul.f32 %v785_v16, %v785_v16 }
 0x27e   : > { %v781_v18 = vpop.f32.mrf.mxu1 }
 0x27f   : > { %v786_v19 = vadd.f32 %v781_v18, %v1574_v60 }
 0x280   : > { %v1242_v20 = vpop.f32.mrf.mxu1 }
 0x281   : > { %v787_v22 = vadd.f32 %v786_v19, %v785_v16  ;;  %v795_v23 = vmul.f32 %v786_v19, %v786_v19  ;;  %967 = vst [vmem:[%s282_s16 + $0x8] sm:$0xff] %v786_v19 }
 0x283   : > { %v788_v0 = vrot.slane %v787_v22, 4  ;;  %v796_v24 = vadd.f32 %v795_v23, %v794_v21 }
 0x285   : > { %v789_v25 = vadd.f32 %v788_v0, %v787_v22  ;;  %v797_v26 = vrot.slane %v796_v24, 4 }
 0x287   : > { %v790_v27 = vrot.slane %v789_v25, 2  ;;  %v798_v28 = vadd.f32 %v797_v26, %v796_v24 }
 0x289   : > { %v791_v29 = vadd.f32 %v790_v27, %v789_v25  ;;  %v799_v30 = vrot.slane %v798_v28, 2 }
 0x28b   : > { %v792_v31 = vrot.slane %v791_v29, 1  ;;  %v800_v32 = vadd.f32 %v799_v30, %v798_v28 }
 0x28d   : > { %v793_v33 = vadd.f32 %v792_v31, %v791_v29  ;;  %v801_v34 = vrot.slane %v800_v32, 1 }
 0x28f   : > { %1276 = vmatmul.mubr.f32.vlgmr.msra.gmra.mxu0 %v793_v33  ;;  %v802_v35 = vadd.f32 %v801_v34, %v800_v32 }
 0x291   : > { %1311 = vmatmul.mubr.f32.vlgmr.msra.gmra.mxu1 %v802_v35 }
 0x34f   : > { %v885_v36 = vpop.f32.mrf.mxu0 }
 0x351   : > { %v1277_v37 = vpop.f32.mrf.mxu0  ;;  %v955_v38 = vpop.f32.mrf.mxu1 }
 0x352   : > { %v960_v39 = vrot.slane %v955_v38, 7 }
 0x353   : > { %v1312_v40 = vpop.f32.mrf.mxu1 }
 0x354   : > { %v963_v41 = vsel %vm962_vm4, %v885_v36, %v960_v39 }
 0x355   : > { %965 = vst.msk [vmem:[%s286_s20] sm:$0x3] %vm964_vm5, %v963_v41 }
 0x356 PF: > { %s18_s24 = sadd.s32 1, %s1356_s24  }
 0x357   : > { %p15_p4 = scmp.ge.s32.totalorder %s18_s24, 4  }
 0x359   :  { %17 = sbr.rel (!%p15_p4) target bundleno = 1 (0x1), region = 86 }

// kernel: prompt_generator_forward.7
= control target key start
LH: loop header
LB: loop body
LE: loop exit
PB: predicated region body
PF: predicated region fallthrough
CT: control target
= control target key end

     0   :  { %s1024_s18 = smov 0   ;;  %s1182_s0 = inlined_call_operand.vmem [shape: f32[2,16,128], index: 0, kind: input, shape index: {}]   ;;  %s1183_s1 = inlined_call_operand.vmem [shape: f32[1,128], index: 1, kind: input, shape index: {}]   ;;  %s1184_s2 = inlined_call_operand.vmem [shape: f32[1,128], index: 2, kind: input, shape index: {}]   ;;  %s1185_s3 = inlined_call_operand.vmem [shape: bf16[48,16], index: 3, kind: input, shape index: {}]   ;;  %s1186_s4 = inlined_call_operand.vmem [shape: bf16[384,48], index: 4, kind: input, shape index: {}]   ;;  %s1187_s5 = inlined_call_operand.vmem [shape: f32[2,16,48], index: 5, kind: output, shape index: {}]  }
   0x1 LB: > { %s791_s19 = sadd.s32 4294967295, %s990_s18   ;;  %p795_p0 = scmp.ge.s32.totalorder %s990_s18, 1  ;;  %s990_s18 = sphi %s1024_s18, %s15_s18  }
   0x2   : > { %p187_p1 = scmp.lt.s32.totalorder %s990_s18, 3 }
   0x4   : > { %p188_p2 = pnand %p795_p0, %p187_p1 }
   0x5   : > { %p215_p3 = scmp.lt.s32.totalorder (!%p188_p2), %s791_s19, 1 }
   0x6   : > { %191 = sbr.rel (%p188_p2) target bundleno = 644 (0x284), region = 40 }
   0xb   : > { %v992_v0 = vmov 0.0   ;;  %s1189_s19 = smov (!%p215_p3, %s791_s19), 1  ;;  %vm993_vm0 = vmmov 0   ;;  %v800_v1 = vld [vmem:[%s1183_s1] ss:$0 sm:$0xff]  ;;  %v959_v2 = vld [vmem:[%s1186_s4 + $0x38] sm:$0xff]  }
   0xc   : > { %869 = vmatprep.subr.bf16.mxu0 %v992_v0  ;;  %901 = vmatprep.subr.bf16.mxu1 %v992_v0  ;;  %s834_s22 = sshll.u32 %s1189_s19, 4  ;;  %v801_v3 = vld [vmem:[%s1184_s2] ss:$0 sm:$0xff]  ;;  %v960_v6 = vld [vmem:[%s1186_s4 + $0x30] sm:$0xff]   ;;  %v962_v11 = vld [vmem:[%s1186_s4 + $0x28] sm:$0xff]   ;;  %vm260_vm3 = vcmask 130048  }
   0xd   : > { %871 = vmatprep.mubr.msk.bf16.mxu0 %vm993_vm0, %v992_v0  ;;  %917 = vmatprep.mubr.msk.bf16.mxu1 %vm993_vm0, %v992_v0  ;;  %s219_s27 = scalar_lea.vmem %s1182_s0, %s834_s22  ;;  %v957_v16 = vld [vmem:[%s1185_s3] sm:$0xff]   ;;  %v966_v19 = vld [vmem:[%s1186_s4 + $0x18] sm:$0xff]   ;;  %v968_v20 = vld [vmem:[%s1186_s4 + $0x10] sm:$0xff]   ;;  %s224_s15 = scalar_lea.vmem %s1187_s5, %s834_s22  ;;  %vm733_vm5 = vcmask 392192  }
   0xe   : > { %v226_v4 = vld [vmem:[%s219_s27] sm:$0xff]  ;;  %v227_v5 = vld [vmem:[%s219_s27 + $0x8] sm:$0xff]  ;;  %902 = vmatpush3.bf16.msra.mxu1 %v959_v2  ;;  %v961_v22 = vld [vmem:[%s1186_s4 + $0x78] sm:$0xff]  }
   0xf   : > { %v235_v7 = vmul.f32 %v800_v1, %v226_v4  ;;  %v236_v8 = vmul.f32 %v800_v1, %v227_v5  ;;  %903 = vmatprep.subr.bf16.mxu1 %v992_v0  ;;  %v964_v18 = vld [vmem:[%s1186_s4 + $0x20] sm:$0xff]   ;;  %v958_v21 = vld [vmem:[%s1185_s3 + $0x8] sm:$0xff]   ;;  %v963_v23 = vld [vmem:[%s1186_s4 + $0x70] sm:$0xff]  }
  0x10   : > { %v965_v24 = vld [vmem:[%s1186_s4 + $0x68] sm:$0xff]   ;;  %v967_v25 = vld [vmem:[%s1186_s4 + $0x60] sm:$0xff]   ;;  %v969_v26 = vld [vmem:[%s1186_s4 + $0x58] sm:$0xff]  }
  0x11   : > { %v244_v9 = vadd.f32 %v801_v3, %v235_v7  ;;  %v245_v10 = vadd.f32 %v801_v3, %v236_v8  ;;  %v970_v27 = vld [vmem:[%s1186_s4 + $0x8] sm:$0xff]   ;;  %v971_v28 = vld [vmem:[%s1186_s4 + $0x50] sm:$0xff]   ;;  %v972_v29 = vld [vmem:[%s1186_s4] sm:$0xff]  }
  0x12   : > { %904 = vmatpush3.bf16.msra.mxu1 %v960_v6  ;;  %v973_v30 = vld [vmem:[%s1186_s4 + $0x48] sm:$0xff]   ;;  %v974_v31 = vld [vmem:[%s1186_s4 + $0x40] sm:$0xff]   ;;  %v976_v35 = vld [vmem:[%s1186_s4 + $0xb8] sm:$0xff]  }
  0x13   : > { %vm246_vm1 = vcmp.ge.f32.partialorder %v244_v9, 0.0  ;;  %vm247_vm2 = vcmp.ge.f32.partialorder %v245_v10, 0.0  ;;  %v248_v12 = vmul.f32 0.2, %v244_v9  ;;  %v249_v13 = vmul.f32 0.2, %v245_v10  ;;  %905 = vmatprep.subr.bf16.mxu1 %v992_v0 }
  0x14   : > { %v977_v39 = vld [vmem:[%s1186_s4 + $0xb0] sm:$0xff]   ;;  %v978_v45 = vld [vmem:[%s1186_s4 + $0xa8] sm:$0xff]   ;;  %v979_v46 = vld [vmem:[%s1186_s4 + $0xa0] sm:$0xff]  }
  0x15   : > { %v250_v14 = vsel %vm246_vm1, %v244_v9, %v248_v12  ;;  %v251_v15 = vsel %vm247_vm2, %v245_v10, %v249_v13  ;;  %v975_v44 = vld [vmem:[%s1185_s3 + $0x10] sm:$0xff]   ;;  %v980_v47 = vld [vmem:[%s1186_s4 + $0x98] sm:$0xff]   ;;  %v982_v49 = vld [vmem:[%s1186_s4 + $0x88] sm:$0xff]  }
  0x16   : > { %v1066_v17 = vpack.c.bf16 %v251_v15, %v250_v14  ;;  %906 = vmatpush3.bf16.msra.mxu1 %v962_v11  ;;  %v981_v48 = vld [vmem:[%s1186_s4 + $0x90] sm:$0xff]   ;;  %v983_v50 = vld [vmem:[%s1186_s4 + $0x80] sm:$0xff]  }
  0x17   : > { %907 = vmatprep.subr.bf16.mxu1 %v992_v0 }
  0x18   : > { %870 = vmatpush3.bf16.msra.mxu0 %v1066_v17 }
  0x19   : > { %875 = vmatprep.subr.bf16.mxu0 %v992_v0 }
  0x1a   : > { %908 = vmatpush3.bf16.msra.mxu1 %v964_v18 }
  0x1b   : > { %872 = vmatmul.mubr.msk.bf16.vlgmr.msra.gmra.mxu0 %vm260_vm3, %v957_v16  ;;  %909 = vmatprep.subr.bf16.mxu1 %v992_v0 }
  0x1c   : > { %876 = vmatpush3.bf16.msra.mxu0 %v1066_v17  ;;  %877 = vmatprep.mubr.msk.bf16.mxu0 %vm993_vm0, %v992_v0 }
  0x1d   : > { %881 = vmatprep.subr.bf16.mxu0 %v992_v0 }
  0x1e   : > { %910 = vmatpush3.bf16.msra.mxu1 %v966_v19 }
  0x1f   : > { %911 = vmatprep.subr.bf16.mxu1 %v992_v0 }
  0x22   : > { %912 = vmatpush3.bf16.msra.mxu1 %v968_v20 }
  0x23   : > { %878 = vmatmul.mubr.msk.bf16.vlgmr.msra.gmra.mxu0 %vm260_vm3, %v958_v21  ;;  %913 = vmatprep.subr.bf16.mxu1 %v992_v0 }
  0x24   : > { %882 = vmatpush3.bf16.msra.mxu0 %v961_v22  ;;  %897 = vmatprep.mubr.msk.bf16.mxu0 %vm993_vm0, %v992_v0 }
  0x25   : > { %883 = vmatprep.subr.bf16.mxu0 %v992_v0 }
  0x26   : > { %914 = vmatpush3.bf16.msra.mxu1 %v970_v27 }
  0x27   : > { %915 = vmatprep.subr.bf16.mxu1 %v992_v0 }
  0x28   : > { %884 = vmatpush3.bf16.msra.mxu0 %v963_v23 }
  0x29   : > { %885 = vmatprep.subr.bf16.mxu0 %v992_v0 }
  0x2a   : > { %916 = vmatpush3.bf16.msra.mxu1 %v972_v29 }
  0x2b   : > { %927 = vmatprep.subr.bf16.mxu1 %v992_v0 }
  0x2c   : > { %886 = vmatpush3.bf16.msra.mxu0 %v965_v24 }
  0x2d   : > { %887 = vmatprep.subr.bf16.mxu0 %v992_v0 }
  0x30   : > { %888 = vmatpush3.bf16.msra.mxu0 %v967_v25 }
  0x31   : > { %889 = vmatprep.subr.bf16.mxu0 %v992_v0 }
  0x34   : > { %890 = vmatpush3.bf16.msra.mxu0 %v969_v26 }
  0x35   : > { %891 = vmatprep.subr.bf16.mxu0 %v992_v0 }
  0x38   : > { %892 = vmatpush3.bf16.msra.mxu0 %v971_v28 }
  0x39   : > { %893 = vmatprep.subr.bf16.mxu0 %v992_v0 }
  0x3c   : > { %894 = vmatpush3.bf16.msra.mxu0 %v973_v30 }
  0x3d   : > { %895 = vmatprep.subr.bf16.mxu0 %v992_v0 }
  0x40   : > { %896 = vmatpush3.bf16.msra.mxu0 %v974_v31 }
  0x41   : > { %921 = vmatprep.subr.bf16.mxu0 %v992_v0 }
  0xdb   : > { %v298_v32 = vpop.f32.mrf.mxu0 }
  0xdd   : > { %v873_v33 = vpop.f32.mrf.mxu0 }
  0xdf   : > { %v301_v34 = vpop.f32.mrf.mxu0 }
  0xe0   : > { %v305_v36 = vpack.c.bf16 %v301_v34, %v298_v32 }
  0xe1   : > { %v874_v37 = vpop.f32.mrf.mxu0 }
  0xe2   : > { %918 = vmatmul.mubr.bf16.vlgmr.msra.gmra.mxu1 %v305_v36 }
  0xe3   : > { %v366_v38 = vpop.f32.mrf.mxu0  ;;  %928 = vmatpush3.bf16.msra.mxu1 %v976_v35  ;;  %943 = vmatprep.mubr.msk.bf16.mxu1 %vm993_vm0, %v992_v0 }
  0xe4   : > { %929 = vmatprep.subr.bf16.mxu1 %v992_v0 }
  0xe5   : > { %v879_v40 = vpop.f32.mrf.mxu0 }
  0xe7   : > { %v369_v41 = vpop.f32.mrf.mxu0  ;;  %930 = vmatpush3.bf16.msra.mxu1 %v977_v39 }
  0xe8   : > { %v373_v42 = vpack.c.bf16 %v369_v41, %v366_v38  ;;  %931 = vmatprep.subr.bf16.mxu1 %v992_v0 }
  0xe9   : > { %v880_v43 = vpop.f32.mrf.mxu0 }
  0xea   : > { %898 = vmatmul.mubr.bf16.vlgmr.msra.gmra.mxu0 %v373_v42 }
  0xeb   : > { %922 = vmatpush3.bf16.msra.mxu0 %v1066_v17  ;;  %923 = vmatprep.mubr.msk.bf16.mxu0 %vm993_vm0, %v992_v0 }
  0xec   : > { %932 = vmatpush3.bf16.msra.mxu1 %v978_v45 }
  0xed   : > { %933 = vmatprep.subr.bf16.mxu1 %v992_v0 }
  0xf0   : > { %934 = vmatpush3.bf16.msra.mxu1 %v979_v46 }
  0xf1   : > { %935 = vmatprep.subr.bf16.mxu1 %v992_v0 }
  0xf2   : > { %924 = vmatmul.mubr.msk.bf16.vlgmr.msra.gmra.mxu0 %vm260_vm3, %v975_v44 }
  0xf4   : > { %936 = vmatpush3.bf16.msra.mxu1 %v980_v47 }
  0xf5   : > { %937 = vmatprep.subr.bf16.mxu1 %v992_v0 }
  0xf8   : > { %938 = vmatpush3.bf16.msra.mxu1 %v981_v48 }
  0xf9   : > { %939 = vmatprep.subr.bf16.mxu1 %v992_v0 }
  0xfc   : > { %940 = vmatpush3.bf16.msra.mxu1 %v982_v49 }
  0xfd   : > { %941 = vmatprep.subr.bf16.mxu1 %v992_v0 }
 0x100   : > { %942 = vmatpush3.bf16.msra.mxu1 %v983_v50 }
 0x1a2   : > { %v561_v51 = vpop.f32.mrf.mxu1 }
 0x1a4   : > { %v919_v52 = vpop.f32.mrf.mxu1 }
 0x1a6   : > { %v564_v53 = vpop.f32.mrf.mxu1 }
 0x1a8   : > { %v920_v54 = vpop.f32.mrf.mxu1 }
 0x1aa   : > { %v472_v55 = vpop.f32.mrf.mxu0 }
 0x1ab   : > { %v562_v56 = vadd.f32 %v561_v51, %v472_v55 }
 0x1ac   : > { %v899_v57 = vpop.f32.mrf.mxu0 }
 0x1ae   : > { %v475_v58 = vpop.f32.mrf.mxu0 }
 0x1af   : > { %v565_v59 = vadd.f32 %v564_v53, %v475_v58 }
 0x1b0   : > { %v900_v60 = vpop.f32.mrf.mxu0 }
 0x1b2   : > { %v612_v61 = vpop.f32.mrf.mxu0 }
 0x1b4   : > { %v925_v62 = vpop.f32.mrf.mxu0 }
 0x1b6   : > { %v615_v63 = vpop.f32.mrf.mxu0 }
 0x1b7   : > { %v619_v0 = vpack.c.bf16 %v615_v63, %v612_v61 }
 0x1b8   : > { %v926_v1 = vpop.f32.mrf.mxu0 }
 0x1b9   : > { %944 = vmatmul.mubr.bf16.vlgmr.msra.gmra.mxu1 %v619_v0 }
 0x279   : > { %v718_v2 = vpop.f32.mrf.mxu1 }
 0x27a   : > { %v725_v3 = vadd.f32 %v718_v2, %v562_v56 }
 0x27b   : > { %v945_v4 = vpop.f32.mrf.mxu1 }
 0x27c   : > { %vm727_vm4 = vcmp.ge.f32.partialorder %v725_v3, 0.0  ;;  %v729_v5 = vmul.f32 0.2, %v725_v3 }
 0x27d   : > { %v721_v6 = vpop.f32.mrf.mxu1 }
 0x27e   : > { %v731_v7 = vsel %vm727_vm4, %v725_v3, %v729_v5  ;;  %v726_v8 = vadd.f32 %v721_v6, %v565_v59 }
 0x27f   : > { %734 = vst.msk [vmem:[%s224_s15] sm:$0xff] %vm733_vm5, %v731_v7  ;;  %v946_v9 = vpop.f32.mrf.mxu1 }
 0x280   : > { %vm728_vm6 = vcmp.ge.f32.partialorder %v726_v8, 0.0  ;;  %v730_v10 = vmul.f32 0.2, %v726_v8 }
 0x282   : > { %v732_v11 = vsel %vm728_vm6, %v726_v8, %v730_v10 }
 0x283   : > { %735 = vst.msk [vmem:[%s224_s15 + $0x8] sm:$0xff] %vm733_vm5, %v732_v11 }
 0x284 PF: > { %s15_s18 = sadd.s32 1, %s990_s18  }
 0x285   : > { %p12_p4 = scmp.ge.s32.totalorder %s15_s18, 4  }
 0x287   :  { %14 = sbr.rel (!%p12_p4) target bundleno = 1 (0x1), region = 70 }

</bundles_post_ra>
